<compile_context>
chip_gen: v6e
topology: v6e:2x2x1
jax: 0.10.0
libtpu: 0.0.40
codegen_flags: <defaults>
</compile_context>

<pallas_src>
import functools
import math

import jax
import jax.numpy as jnp
from jax import lax
from jax.experimental import pallas as pl
from jax.experimental.pallas import tpu as pltpu

LN_EPS = 1e-5  # PyTorch nn.LayerNorm default


def _round_up(x, m):
    return (x + m - 1) // m * m


def _layer_norm(x, gamma, beta):
    mu = jnp.mean(x, axis=-1, keepdims=True)
    xc = x - mu
    var = jnp.mean(xc * xc, axis=-1, keepdims=True)
    return xc * lax.rsqrt(var + LN_EPS) * gamma + beta


def temporal_encoder_kernel(
    x_ref,      # (TB, S, D)    f32   input batch tile (resident across the layer axis)
    pe_ref,     # (S, D)        f32   positional-encoding table
    wqkv_ref,   # (1, D, 3D)    bf16  fused attention in-proj weight of this layer
    wo_ref,     # (1, D, D)     bf16  attention out-proj weight
    w1_ref,     # (1, D, FF)    bf16  FFN linear1 weight
    w2_ref,     # (1, FF, D)    bf16  FFN linear2 weight
    vec_ref,    # (1, 8, W)     f32   packed per-layer vectors (biases + LN affines)
    out_ref,    # (TB, S, D)    out dtype
    acc_ref,    # (TB, S, D)    f32   resident activation scratch
    *, nhead,
):
    layer = pl.program_id(1)
    tb, seq, d = x_ref.shape
    ff = w1_ref.shape[2]
    dh = d // nhead
    rows = tb * seq

    @pl.when(layer == 0)
    def _():
        # PositionalEncoding (eval: Dropout(0.1) == identity)
        acc_ref[...] = x_ref[...] + pe_ref[...][None]

    vec = vec_ref[0]
    b_qkv = vec[0:1, :3 * d]
    b_o, g1, be1 = vec[1:2, :d], vec[2:3, :d], vec[3:4, :d]
    b_f1 = vec[4:5, :ff]
    b_f2, g2, be2 = vec[5:6, :d], vec[6:7, :d], vec[7:8, :d]

    h = acc_ref[...].reshape(rows, d)                        # (TB*S, D) f32

    # ---- multi-head self-attention (bf16 MXU operands, f32 accumulation) ----
    qkv = jnp.dot(h.astype(jnp.bfloat16), wqkv_ref[0],
                  preferred_element_type=jnp.float32) + b_qkv
    qkv = qkv.reshape(tb, seq, 3 * d)
    wo = wo_ref[0]
    scale = 1.0 / math.sqrt(dh)

    proj = jnp.zeros((rows, d), jnp.float32)
    for head in range(nhead):
        lo = head * dh
        q_h = qkv[:, :, lo:lo + dh].astype(jnp.bfloat16)
        k_h = qkv[:, :, d + lo:d + lo + dh].astype(jnp.bfloat16)
        v_h = qkv[:, :, 2 * d + lo:2 * d + lo + dh].astype(jnp.bfloat16)
        att = jnp.einsum('bqd,bkd->bqk', q_h, k_h,
                         preferred_element_type=jnp.float32) * scale
        att = att - jnp.max(att, axis=-1, keepdims=True)      # f32 softmax
        p = jnp.exp(att)
        p = p / jnp.sum(p, axis=-1, keepdims=True)
        ctx = jnp.einsum('bqk,bkd->bqd', p.astype(jnp.bfloat16), v_h,
                         preferred_element_type=jnp.float32)   # (TB, S, Dh)
        # Per-head slice of the out-projection (avoids an in-kernel lane concat).
        proj = proj + jnp.dot(ctx.reshape(rows, dh).astype(jnp.bfloat16),
                              wo[lo:lo + dh, :],
                              preferred_element_type=jnp.float32)

    h = _layer_norm(h + proj + b_o, g1, be1)                   # post-LN, f32

    # ---- feed-forward: Linear -> ReLU -> Linear (dropouts identity in eval) ----
    f = jnp.dot(h.astype(jnp.bfloat16), w1_ref[0],
                preferred_element_type=jnp.float32) + b_f1
    f = jnp.maximum(f, 0.0)
    f = jnp.dot(f.astype(jnp.bfloat16), w2_ref[0],
                preferred_element_type=jnp.float32) + b_f2
    h = _layer_norm(h + f, g2, be2)

    acc_ref[...] = h.reshape(tb, seq, d)

    @pl.when(layer == pl.num_programs(1) - 1)
    def _():
        # `out += x` residual of the raw (non pos-encoded) input; lane-dense store.
        out_ref[...] = (acc_ref[...] + x_ref[...]).astype(out_ref.dtype)


@functools.partial(jax.jit, static_argnames=("nhead", "block_batch", "out_dtype"))
def vibet_temporal_encoder(x, pe, params, *, nhead, block_batch=8,
                           out_dtype=jnp.float32):
    """x: (B, S, D) f32. pe: (S, D) f32. params: output of prepare_encoder_params."""
    n, s, d = x.shape
    wqkv, wo, w1, w2, vec = (params["wqkv"], params["wo"], params["w1"],
                             params["w2"], params["vec"])
    num_layers = wqkv.shape[0]
    ff = w1.shape[2]
    vw = vec.shape[2]
    assert d % 128 == 0 and ff % 128 == 0, "d_model / dim_feedforward must be lane-dense"
    assert s % 8 == 0, "seq_len must be a multiple of 8 (sublane tile)"
    assert d % nhead == 0

    tb = max(1, min(block_batch, n))
    n_pad = _round_up(n, tb)
    xp = x if n_pad == n else jnp.pad(x, ((0, n_pad - n), (0, 0), (0, 0)))
    grid = (n_pad // tb, num_layers)

    # Advisory cost estimate so XLA schedules around the custom call.
    out_bytes = n_pad * s * d * jnp.dtype(out_dtype).itemsize
    w_bytes = 2 * (wqkv.size + wo.size + w1.size + w2.size) + 4 * vec.size
    flops = num_layers * (2 * n_pad * s * d * (4 * d + 2 * ff) + 4 * n_pad * s * s * d)
    transcendentals = num_layers * n_pad * s * (nhead * s + 2)
    bytes_accessed = 4 * (xp.size + pe.size) + out_bytes + grid[0] * w_bytes

    out = pl.pallas_call(
        functools.partial(temporal_encoder_kernel, nhead=nhead),
        out_shape=jax.ShapeDtypeStruct((n_pad, s, d), out_dtype),
        grid_spec=pltpu.PrefetchScalarGridSpec(
            num_scalar_prefetch=0,
            grid=grid,
            in_specs=[
                pl.BlockSpec((tb, s, d), lambda b, l: (b, 0, 0)),    # x (resident over layers)
                pl.BlockSpec((s, d), lambda b, l: (0, 0)),           # positional encoding
                pl.BlockSpec((1, d, 3 * d), lambda b, l: (l, 0, 0)), # Wqkv of layer l
                pl.BlockSpec((1, d, d), lambda b, l: (l, 0, 0)),     # Wo
                pl.BlockSpec((1, d, ff), lambda b, l: (l, 0, 0)),    # W1
                pl.BlockSpec((1, ff, d), lambda b, l: (l, 0, 0)),    # W2
                pl.BlockSpec((1, 8, vw), lambda b, l: (l, 0, 0)),    # packed bias/LN slab
            ],
            out_specs=pl.BlockSpec((tb, s, d), lambda b, l: (b, 0, 0)),
            scratch_shapes=[pltpu.VMEM((tb, s, d), jnp.float32)],
        ),
        compiler_params=pltpu.CompilerParams(
            dimension_semantics=("parallel", "arbitrary")),
        cost_estimate=pl.CostEstimate(flops=int(flops),
                                      transcendentals=int(transcendentals),
                                      bytes_accessed=int(bytes_accessed)),
    )(xp, pe, wqkv, wo, w1, w2, vec)

    return out if n_pad == n else out[:n]


def make_pos_encoding(seq_len, d_model):
    """PositionalEncoding `pe` buffer (sin on even cols, cos on odd cols)."""
    position = jnp.arange(seq_len, dtype=jnp.float32)[:, None]
    div_term = jnp.exp(jnp.arange(0, d_model, 2, dtype=jnp.float32)
                       * (-math.log(10000.0) / d_model))
    pe = jnp.zeros((seq_len, d_model), jnp.float32)
    pe = pe.at[:, 0::2].set(jnp.sin(position * div_term))
    pe = pe.at[:, 1::2].set(jnp.cos(position * div_term))
    return pe


def make_params(key, num_layers, d_model, nhead, ff_dim):
    """Synthetic TransformerEncoderLayer parameters. Linear weights are stored
    pre-transposed to (in, out) (i.e. the .T of the PyTorch parameters)."""
    del nhead  # head count does not change the parameter shapes
    init = lambda k, shape, sc=0.05: sc * jax.random.normal(k, shape, jnp.float32)
    layers = []
    for _ in range(num_layers):
        key, *ks = jax.random.split(key, 13)
        layers.append(dict(
            wqkv=init(ks[0], (d_model, 3 * d_model)),   # in_proj_weight.T
            bqkv=init(ks[1], (3 * d_model,)),
            wo=init(ks[2], (d_model, d_model)),         # out_proj.weight.T
            bo=init(ks[3], (d_model,)),
            ln1_g=1.0 + 0.1 * jax.random.normal(ks[4], (d_model,), jnp.float32),
            ln1_b=0.1 * jax.random.normal(ks[5], (d_model,), jnp.float32),
            w1=init(ks[6], (d_model, ff_dim)),          # linear1.weight.T
            bf1=init(ks[7], (ff_dim,)),
            w2=init(ks[8], (ff_dim, d_model)),          # linear2.weight.T
            bf2=init(ks[9], (d_model,)),
            ln2_g=1.0 + 0.1 * jax.random.normal(ks[10], (d_model,), jnp.float32),
            ln2_b=0.1 * jax.random.normal(ks[11], (d_model,), jnp.float32),
        ))
    return layers


def prepare_encoder_params(layers, d_model, ff_dim):
    """One-time weight prep (kept OUT of the per-call jitted path): stack per-layer
    weights, cast matmul operands to bf16, pack the 8 per-layer vectors into one slab."""
    num_layers = len(layers)
    stack = lambda name: jnp.stack([p[name] for p in layers])
    wqkv = stack("wqkv").astype(jnp.bfloat16)
    wo = stack("wo").astype(jnp.bfloat16)
    w1 = stack("w1").astype(jnp.bfloat16)
    w2 = stack("w2").astype(jnp.bfloat16)
    vw = _round_up(max(3 * d_model, ff_dim), 128)
    vec = jnp.zeros((num_layers, 8, vw), jnp.float32)
    for l, p in enumerate(layers):
        vec = vec.at[l, 0, :3 * d_model].set(p["bqkv"])
        vec = vec.at[l, 1, :d_model].set(p["bo"])
        vec = vec.at[l, 2, :d_model].set(p["ln1_g"])
        vec = vec.at[l, 3, :d_model].set(p["ln1_b"])
        vec = vec.at[l, 4, :ff_dim].set(p["bf1"])
        vec = vec.at[l, 5, :d_model].set(p["bf2"])
        vec = vec.at[l, 6, :d_model].set(p["ln2_g"])
        vec = vec.at[l, 7, :d_model].set(p["ln2_b"])
    return dict(wqkv=wqkv, wo=wo, w1=w1, w2=w2, vec=vec)


def temporal_encoder_ref(x, layers, pe, nhead, matmul_dtype=None):
    """Pure-JAX reference mirroring VIBET's TemporalEncoder forward (eval mode).
    matmul_dtype=jnp.bfloat16 emulates the kernel's bf16-operand / f32-accumulate
    matmuls for a tight numerical comparison; None keeps everything in f32."""
    cast = (lambda a: a) if matmul_dtype is None else (lambda a: a.astype(matmul_dtype))
    mm = lambda eq, a, b: jnp.einsum(eq, cast(a), cast(b),
                                     preferred_element_type=jnp.float32)
    n, s, d = x.shape
    dh = d // nhead
    h = x + pe[None]
    for p in layers:
        qkv = mm("bsd,de->bse", h, p["wqkv"]) + p["bqkv"]
        q = qkv[..., :d].reshape(n, s, nhead, dh)
        k = qkv[..., d:2 * d].reshape(n, s, nhead, dh)
        v = qkv[..., 2 * d:].reshape(n, s, nhead, dh)
        att = mm("bqhd,bkhd->bhqk", q, k) / math.sqrt(dh)
        prob = jax.nn.softmax(att, axis=-1)
        ctx = mm("bhqk,bkhd->bqhd", prob, v).reshape(n, s, d)
        attn = mm("bsd,de->bse", ctx, p["wo"]) + p["bo"]
        h = _layer_norm(h + attn, p["ln1_g"], p["ln1_b"])
        f = jnp.maximum(mm("bsd,df->bsf", h, p["w1"]) + p["bf1"], 0.0)
        f = mm("bsf,fd->bsd", f, p["w2"]) + p["bf2"]
        h = _layer_norm(h + f, p["ln2_g"], p["ln2_b"])
    return h + x


if __name__ == "__main__":
    # Small shapes consistent with VIBET(seq_len=8, d_model=128, nhead=4, num_layers=2,
    # dim_feedforward=256); input is (batch, seq_len, d_model) frame features.
    BATCH, SEQ, D_MODEL, NHEAD, N_LAYERS, FF = 4, 8, 128, 4, 2, 256
    BLOCK_BATCH = 2   # 2 batch tiles -> both v7x TensorCores get work

    key = jax.random.PRNGKey(0)
    kx, kp = jax.random.split(key)
    x = jax.random.normal(kx, (BATCH, SEQ, D_MODEL), jnp.float32)
    layers = make_params(kp, N_LAYERS, D_MODEL, NHEAD, FF)
    pe = make_pos_encoding(SEQ, D_MODEL)
    params = prepare_encoder_params(layers, D_MODEL, FF)   # one-time prep, not per-call

    out = vibet_temporal_encoder(x, pe, params, nhead=NHEAD, block_batch=BLOCK_BATCH)
    out = jax.block_until_ready(out)
    assert out.shape == (BATCH, SEQ, D_MODEL)

    # Tight check vs a reference with identical bf16-operand matmul numerics.
    ref_bf16 = temporal_encoder_ref(x, layers, pe, NHEAD, matmul_dtype=jnp.bfloat16)
    assert jnp.allclose(out, ref_bf16, atol=2e-2, rtol=2e-2), "mismatch vs bf16 reference"

    # Looser check vs the pure-f32 semantic reference (bf16 quantization noise).
    ref_f32 = temporal_encoder_ref(x, layers, pe, NHEAD)
    assert jnp.allclose(out, ref_f32, atol=1e-1, rtol=1e-1), "mismatch vs f32 reference"

    print("KERNEL_OK")
</pallas_src>

<mosaic_0001>
module attributes {stable_mosaic.version = 11 : i64} {
  func.func @temporal_encoder_kernel(%arg0: i32, %arg1: i32, %arg2: memref<2x8x128xf32, #tpu.memory_space<vmem>>, %arg3: memref<8x128xf32, #tpu.memory_space<vmem>>, %arg4: memref<1x128x384xbf16, #tpu.memory_space<vmem>>, %arg5: memref<1x128x128xbf16, #tpu.memory_space<vmem>>, %arg6: memref<1x128x256xbf16, #tpu.memory_space<vmem>>, %arg7: memref<1x256x128xbf16, #tpu.memory_space<vmem>>, %arg8: memref<1x8x384xf32, #tpu.memory_space<vmem>>, %arg9: memref<2x8x128xf32, #tpu.memory_space<vmem>>, %arg10: memref<2x8x128xf32, #tpu.memory_space<vmem>>) attributes {dimension_semantics = [#tpu.dimension_semantics<parallel>, #tpu.dimension_semantics<arbitrary>], iteration_bounds = array<i64: 2, 2>, scalar_prefetch = 0 : i64, scratch_operands = 1 : i64, tpu.core_type = #tpu.core_type<tc>, window_params = [{transform_indices = @transform_0, window_bounds = array<i64: 2, 8, 128>}, {pipeline_mode = #tpu.pipeline_mode<synchronous>, transform_indices = @transform_1, window_bounds = array<i64: 8, 128>}, {transform_indices = @transform_2, window_bounds = array<i64: 1, 128, 384>}, {transform_indices = @transform_3, window_bounds = array<i64: 1, 128, 128>}, {transform_indices = @transform_4, window_bounds = array<i64: 1, 128, 256>}, {transform_indices = @transform_5, window_bounds = array<i64: 1, 256, 128>}, {transform_indices = @transform_6, window_bounds = array<i64: 1, 8, 384>}, {transform_indices = @transform_7, window_bounds = array<i64: 2, 8, 128>}]} {
    %c0_i32 = arith.constant 0 : i32
    %0 = arith.cmpi eq, %arg1, %c0_i32 : i32
    %1 = arith.extui %0 : i1 to i32
    %c0_i32_0 = arith.constant 0 : i32
    %2 = arith.cmpi ne, %1, %c0_i32_0 : i32
    scf.if %2 {
      %c0_60 = arith.constant 0 : index
      %c0_61 = arith.constant 0 : index
      %c0_62 = arith.constant 0 : index
      %188 = vector.load %arg2[%c0_60, %c0_61, %c0_62] : memref<2x8x128xf32, #tpu.memory_space<vmem>>, vector<2x8x128xf32>
      %c0_63 = arith.constant 0 : index
      %c0_64 = arith.constant 0 : index
      %189 = vector.load %arg3[%c0_63, %c0_64] : memref<8x128xf32, #tpu.memory_space<vmem>>, vector<8x128xf32>
      %190 = vector.shape_cast %189 : vector<8x128xf32> to vector<1x8x128xf32>
      %191 = vector.broadcast %190 : vector<1x8x128xf32> to vector<2x8x128xf32>
      %192 = arith.addf %188, %191 : vector<2x8x128xf32>
      %c0_65 = arith.constant 0 : index
      %c0_66 = arith.constant 0 : index
      %c0_67 = arith.constant 0 : index
      %193 = vector.load %arg10[%c0_65, %c0_66, %c0_67] : memref<2x8x128xf32, #tpu.memory_space<vmem>>, vector<2x8x128xf32>
      tpu.vector_store %arg10[%c0_65, %c0_66, %c0_67], %192 {strides = array<i32>} : memref<2x8x128xf32, #tpu.memory_space<vmem>>, vector<2x8x128xf32>,
    } else {
    }
    %c0 = arith.constant 0 : index
    %c0_1 = arith.constant 0 : index
    %c0_2 = arith.constant 0 : index
    %3 = vector.load %arg8[%c0, %c0_1, %c0_2] : memref<1x8x384xf32, #tpu.memory_space<vmem>>, vector<1x8x384xf32>
    %4 = vector.shape_cast %3 : vector<1x8x384xf32> to vector<8x384xf32>
    %5 = vector.extract_strided_slice %4 {offsets = [0, 0], sizes = [1, 384], strides = [1, 1]} : vector<8x384xf32> to vector<1x384xf32>
    %6 = vector.extract_strided_slice %4 {offsets = [1, 0], sizes = [1, 128], strides = [1, 1]} : vector<8x384xf32> to vector<1x128xf32>
    %7 = vector.extract_strided_slice %4 {offsets = [2, 0], sizes = [1, 128], strides = [1, 1]} : vector<8x384xf32> to vector<1x128xf32>
    %8 = vector.extract_strided_slice %4 {offsets = [3, 0], sizes = [1, 128], strides = [1, 1]} : vector<8x384xf32> to vector<1x128xf32>
    %9 = vector.extract_strided_slice %4 {offsets = [4, 0], sizes = [1, 256], strides = [1, 1]} : vector<8x384xf32> to vector<1x256xf32>
    %10 = vector.extract_strided_slice %4 {offsets = [5, 0], sizes = [1, 128], strides = [1, 1]} : vector<8x384xf32> to vector<1x128xf32>
    %11 = vector.extract_strided_slice %4 {offsets = [6, 0], sizes = [1, 128], strides = [1, 1]} : vector<8x384xf32> to vector<1x128xf32>
    %12 = vector.extract_strided_slice %4 {offsets = [7, 0], sizes = [1, 128], strides = [1, 1]} : vector<8x384xf32> to vector<1x128xf32>
    %c0_3 = arith.constant 0 : index
    %c0_4 = arith.constant 0 : index
    %c0_5 = arith.constant 0 : index
    %13 = vector.load %arg10[%c0_3, %c0_4, %c0_5] : memref<2x8x128xf32, #tpu.memory_space<vmem>>, vector<2x8x128xf32>
    %14 = vector.shape_cast %13 : vector<2x8x128xf32> to vector<16x128xf32>
    %15 = arith.truncf %14 : vector<16x128xf32> to vector<16x128xbf16>
    %c0_6 = arith.constant 0 : index
    %c0_7 = arith.constant 0 : index
    %c0_8 = arith.constant 0 : index
    %16 = vector.load %arg4[%c0_6, %c0_7, %c0_8] : memref<1x128x384xbf16, #tpu.memory_space<vmem>>, vector<1x128x384xbf16>
    %17 = vector.shape_cast %16 : vector<1x128x384xbf16> to vector<128x384xbf16>
    %cst = arith.constant dense<0.000000e+00> : vector<16x384xf32>
    %18 = tpu.matmul %15, %17, %cst {dimension_numbers = #tpu.dot_dimension_numbers<[1], [0], [0], [1], [0, 0, 1, 1], [], []>} : vector<16x128xbf16>, vector<128x384xbf16>, vector<16x384xf32> -> vector<16x384xf32>
    %19 = vector.broadcast %5 : vector<1x384xf32> to vector<16x384xf32>
    %20 = arith.addf %18, %19 : vector<16x384xf32>
    %21 = vector.shape_cast %20 : vector<16x384xf32> to vector<2x8x384xf32>
    %c0_9 = arith.constant 0 : index
    %c0_10 = arith.constant 0 : index
    %c0_11 = arith.constant 0 : index
    %22 = vector.load %arg5[%c0_9, %c0_10, %c0_11] : memref<1x128x128xbf16, #tpu.memory_space<vmem>>, vector<1x128x128xbf16>
    %23 = vector.shape_cast %22 : vector<1x128x128xbf16> to vector<128x128xbf16>
    %cst_12 = arith.constant 0.000000e+00 : f32
    %24 = vector.broadcast %cst_12 : f32 to vector<16x128xf32>
    %25 = vector.extract_strided_slice %21 {offsets = [0, 0, 0], sizes = [2, 8, 32], strides = [1, 1, 1]} : vector<2x8x384xf32> to vector<2x8x32xf32>
    %26 = arith.truncf %25 : vector<2x8x32xf32> to vector<2x8x32xbf16>
    %27 = vector.extract_strided_slice %21 {offsets = [0, 0, 128], sizes = [2, 8, 32], strides = [1, 1, 1]} : vector<2x8x384xf32> to vector<2x8x32xf32>
    %28 = arith.truncf %27 : vector<2x8x32xf32> to vector<2x8x32xbf16>
    %29 = vector.extract_strided_slice %21 {offsets = [0, 0, 256], sizes = [2, 8, 32], strides = [1, 1, 1]} : vector<2x8x384xf32> to vector<2x8x32xf32>
    %30 = arith.truncf %29 : vector<2x8x32xf32> to vector<2x8x32xbf16>
    "tpu.trace_start"() <{level = 10 : i32, message = "bqd,bkd->bqk"}> : () -> ()
    %cst_13 = arith.constant dense<0.000000e+00> : vector<2x8x8xf32>
    %31 = tpu.matmul %26, %28, %cst_13 {dimension_numbers = #tpu.dot_dimension_numbers<[2], [2], [1], [1], [0, 0, 0, 1, 1, 1], [0], [0]>} : vector<2x8x32xbf16>, vector<2x8x32xbf16>, vector<2x8x8xf32> -> vector<2x8x8xf32>
    "tpu.trace_stop"() : () -> ()
    %cst_14 = arith.constant 0.176776692 : f32
    %32 = vector.broadcast %cst_14 : f32 to vector<2x8x8xf32>
    %33 = arith.mulf %31, %32 : vector<2x8x8xf32>
    %cst_15 = arith.constant dense<0xFF800000> : vector<2x8xf32>
    %34 = vector.multi_reduction <maximumf>, %33, %cst_15 [2] : vector<2x8x8xf32> to vector<2x8xf32>
    %35 = vector.shape_cast %34 : vector<2x8xf32> to vector<2x8x1xf32>
    %36 = vector.broadcast %35 : vector<2x8x1xf32> to vector<2x8x8xf32>
    %37 = arith.subf %33, %36 : vector<2x8x8xf32>
    %38 = math.exp %37 : vector<2x8x8xf32>
    %cst_16 = arith.constant dense<0.000000e+00> : vector<2x8xf32>
    %39 = vector.multi_reduction <add>, %38, %cst_16 [2] : vector<2x8x8xf32> to vector<2x8xf32>
    %40 = vector.shape_cast %39 : vector<2x8xf32> to vector<2x8x1xf32>
    %41 = vector.broadcast %40 : vector<2x8x1xf32> to vector<2x8x8xf32>
    %42 = arith.divf %38, %41 : vector<2x8x8xf32>
    %43 = arith.truncf %42 : vector<2x8x8xf32> to vector<2x8x8xbf16>
    "tpu.trace_start"() <{level = 10 : i32, message = "bqk,bkd->bqd"}> : () -> ()
    %cst_17 = arith.constant dense<0.000000e+00> : vector<2x8x32xf32>
    %44 = tpu.matmul %43, %30, %cst_17 {dimension_numbers = #tpu.dot_dimension_numbers<[2], [1], [1], [2], [0, 0, 0, 1, 1, 2], [0], [0]>} : vector<2x8x8xbf16>, vector<2x8x32xbf16>, vector<2x8x32xf32> -> vector<2x8x32xf32>
    "tpu.trace_stop"() : () -> ()
    %45 = vector.shape_cast %44 : vector<2x8x32xf32> to vector<16x32xf32>
    %46 = arith.truncf %45 : vector<16x32xf32> to vector<16x32xbf16>
    %47 = vector.extract_strided_slice %23 {offsets = [0, 0], sizes = [32, 128], strides = [1, 1]} : vector<128x128xbf16> to vector<32x128xbf16>
    %cst_18 = arith.constant dense<0.000000e+00> : vector<16x128xf32>
    %48 = tpu.matmul %46, %47, %cst_18 {dimension_numbers = #tpu.dot_dimension_numbers<[1], [0], [0], [1], [0, 0, 1, 1], [], []>} : vector<16x32xbf16>, vector<32x128xbf16>, vector<16x128xf32> -> vector<16x128xf32>
    %49 = arith.addf %24, %48 : vector<16x128xf32>
    %50 = vector.extract_strided_slice %21 {offsets = [0, 0, 32], sizes = [2, 8, 32], strides = [1, 1, 1]} : vector<2x8x384xf32> to vector<2x8x32xf32>
    %51 = arith.truncf %50 : vector<2x8x32xf32> to vector<2x8x32xbf16>
    %52 = vector.extract_strided_slice %21 {offsets = [0, 0, 160], sizes = [2, 8, 32], strides = [1, 1, 1]} : vector<2x8x384xf32> to vector<2x8x32xf32>
    %53 = arith.truncf %52 : vector<2x8x32xf32> to vector<2x8x32xbf16>
    %54 = vector.extract_strided_slice %21 {offsets = [0, 0, 288], sizes = [2, 8, 32], strides = [1, 1, 1]} : vector<2x8x384xf32> to vector<2x8x32xf32>
    %55 = arith.truncf %54 : vector<2x8x32xf32> to vector<2x8x32xbf16>
    "tpu.trace_start"() <{level = 10 : i32, message = "bqd,bkd->bqk"}> : () -> ()
    %cst_19 = arith.constant dense<0.000000e+00> : vector<2x8x8xf32>
    %56 = tpu.matmul %51, %53, %cst_19 {dimension_numbers = #tpu.dot_dimension_numbers<[2], [2], [1], [1], [0, 0, 0, 1, 1, 1], [0], [0]>} : vector<2x8x32xbf16>, vector<2x8x32xbf16>, vector<2x8x8xf32> -> vector<2x8x8xf32>
    "tpu.trace_stop"() : () -> ()
    %cst_20 = arith.constant 0.176776692 : f32
    %57 = vector.broadcast %cst_20 : f32 to vector<2x8x8xf32>
    %58 = arith.mulf %56, %57 : vector<2x8x8xf32>
    %cst_21 = arith.constant dense<0xFF800000> : vector<2x8xf32>
    %59 = vector.multi_reduction <maximumf>, %58, %cst_21 [2] : vector<2x8x8xf32> to vector<2x8xf32>
    %60 = vector.shape_cast %59 : vector<2x8xf32> to vector<2x8x1xf32>
    %61 = vector.broadcast %60 : vector<2x8x1xf32> to vector<2x8x8xf32>
    %62 = arith.subf %58, %61 : vector<2x8x8xf32>
    %63 = math.exp %62 : vector<2x8x8xf32>
    %cst_22 = arith.constant dense<0.000000e+00> : vector<2x8xf32>
    %64 = vector.multi_reduction <add>, %63, %cst_22 [2] : vector<2x8x8xf32> to vector<2x8xf32>
    %65 = vector.shape_cast %64 : vector<2x8xf32> to vector<2x8x1xf32>
    %66 = vector.broadcast %65 : vector<2x8x1xf32> to vector<2x8x8xf32>
    %67 = arith.divf %63, %66 : vector<2x8x8xf32>
    %68 = arith.truncf %67 : vector<2x8x8xf32> to vector<2x8x8xbf16>
    "tpu.trace_start"() <{level = 10 : i32, message = "bqk,bkd->bqd"}> : () -> ()
    %cst_23 = arith.constant dense<0.000000e+00> : vector<2x8x32xf32>
    %69 = tpu.matmul %68, %55, %cst_23 {dimension_numbers = #tpu.dot_dimension_numbers<[2], [1], [1], [2], [0, 0, 0, 1, 1, 2], [0], [0]>} : vector<2x8x8xbf16>, vector<2x8x32xbf16>, vector<2x8x32xf32> -> vector<2x8x32xf32>
    "tpu.trace_stop"() : () -> ()
    %70 = vector.shape_cast %69 : vector<2x8x32xf32> to vector<16x32xf32>
    %71 = arith.truncf %70 : vector<16x32xf32> to vector<16x32xbf16>
    %72 = vector.extract_strided_slice %23 {offsets = [32, 0], sizes = [32, 128], strides = [1, 1]} : vector<128x128xbf16> to vector<32x128xbf16>
    %cst_24 = arith.constant dense<0.000000e+00> : vector<16x128xf32>
    %73 = tpu.matmul %71, %72, %cst_24 {dimension_numbers = #tpu.dot_dimension_numbers<[1], [0], [0], [1], [0, 0, 1, 1], [], []>} : vector<16x32xbf16>, vector<32x128xbf16>, vector<16x128xf32> -> vector<16x128xf32>
    %74 = arith.addf %49, %73 : vector<16x128xf32>
    %75 = vector.extract_strided_slice %21 {offsets = [0, 0, 64], sizes = [2, 8, 32], strides = [1, 1, 1]} : vector<2x8x384xf32> to vector<2x8x32xf32>
    %76 = arith.truncf %75 : vector<2x8x32xf32> to vector<2x8x32xbf16>
    %77 = vector.extract_strided_slice %21 {offsets = [0, 0, 192], sizes = [2, 8, 32], strides = [1, 1, 1]} : vector<2x8x384xf32> to vector<2x8x32xf32>
    %78 = arith.truncf %77 : vector<2x8x32xf32> to vector<2x8x32xbf16>
    %79 = vector.extract_strided_slice %21 {offsets = [0, 0, 320], sizes = [2, 8, 32], strides = [1, 1, 1]} : vector<2x8x384xf32> to vector<2x8x32xf32>
    %80 = arith.truncf %79 : vector<2x8x32xf32> to vector<2x8x32xbf16>
    "tpu.trace_start"() <{level = 10 : i32, message = "bqd,bkd->bqk"}> : () -> ()
    %cst_25 = arith.constant dense<0.000000e+00> : vector<2x8x8xf32>
    %81 = tpu.matmul %76, %78, %cst_25 {dimension_numbers = #tpu.dot_dimension_numbers<[2], [2], [1], [1], [0, 0, 0, 1, 1, 1], [0], [0]>} : vector<2x8x32xbf16>, vector<2x8x32xbf16>, vector<2x8x8xf32> -> vector<2x8x8xf32>
    "tpu.trace_stop"() : () -> ()
    %cst_26 = arith.constant 0.176776692 : f32
    %82 = vector.broadcast %cst_26 : f32 to vector<2x8x8xf32>
    %83 = arith.mulf %81, %82 : vector<2x8x8xf32>
    %cst_27 = arith.constant dense<0xFF800000> : vector<2x8xf32>
    %84 = vector.multi_reduction <maximumf>, %83, %cst_27 [2] : vector<2x8x8xf32> to vector<2x8xf32>
    %85 = vector.shape_cast %84 : vector<2x8xf32> to vector<2x8x1xf32>
    %86 = vector.broadcast %85 : vector<2x8x1xf32> to vector<2x8x8xf32>
    %87 = arith.subf %83, %86 : vector<2x8x8xf32>
    %88 = math.exp %87 : vector<2x8x8xf32>
    %cst_28 = arith.constant dense<0.000000e+00> : vector<2x8xf32>
    %89 = vector.multi_reduction <add>, %88, %cst_28 [2] : vector<2x8x8xf32> to vector<2x8xf32>
    %90 = vector.shape_cast %89 : vector<2x8xf32> to vector<2x8x1xf32>
    %91 = vector.broadcast %90 : vector<2x8x1xf32> to vector<2x8x8xf32>
    %92 = arith.divf %88, %91 : vector<2x8x8xf32>
    %93 = arith.truncf %92 : vector<2x8x8xf32> to vector<2x8x8xbf16>
    "tpu.trace_start"() <{level = 10 : i32, message = "bqk,bkd->bqd"}> : () -> ()
    %cst_29 = arith.constant dense<0.000000e+00> : vector<2x8x32xf32>
    %94 = tpu.matmul %93, %80, %cst_29 {dimension_numbers = #tpu.dot_dimension_numbers<[2], [1], [1], [2], [0, 0, 0, 1, 1, 2], [0], [0]>} : vector<2x8x8xbf16>, vector<2x8x32xbf16>, vector<2x8x32xf32> -> vector<2x8x32xf32>
    "tpu.trace_stop"() : () -> ()
    %95 = vector.shape_cast %94 : vector<2x8x32xf32> to vector<16x32xf32>
    %96 = arith.truncf %95 : vector<16x32xf32> to vector<16x32xbf16>
    %97 = vector.extract_strided_slice %23 {offsets = [64, 0], sizes = [32, 128], strides = [1, 1]} : vector<128x128xbf16> to vector<32x128xbf16>
    %cst_30 = arith.constant dense<0.000000e+00> : vector<16x128xf32>
    %98 = tpu.matmul %96, %97, %cst_30 {dimension_numbers = #tpu.dot_dimension_numbers<[1], [0], [0], [1], [0, 0, 1, 1], [], []>} : vector<16x32xbf16>, vector<32x128xbf16>, vector<16x128xf32> -> vector<16x128xf32>
    %99 = arith.addf %74, %98 : vector<16x128xf32>
    %100 = vector.extract_strided_slice %21 {offsets = [0, 0, 96], sizes = [2, 8, 32], strides = [1, 1, 1]} : vector<2x8x384xf32> to vector<2x8x32xf32>
    %101 = arith.truncf %100 : vector<2x8x32xf32> to vector<2x8x32xbf16>
    %102 = vector.extract_strided_slice %21 {offsets = [0, 0, 224], sizes = [2, 8, 32], strides = [1, 1, 1]} : vector<2x8x384xf32> to vector<2x8x32xf32>
    %103 = arith.truncf %102 : vector<2x8x32xf32> to vector<2x8x32xbf16>
    %104 = vector.extract_strided_slice %21 {offsets = [0, 0, 352], sizes = [2, 8, 32], strides = [1, 1, 1]} : vector<2x8x384xf32> to vector<2x8x32xf32>
    %105 = arith.truncf %104 : vector<2x8x32xf32> to vector<2x8x32xbf16>
    "tpu.trace_start"() <{level = 10 : i32, message = "bqd,bkd->bqk"}> : () -> ()
    %cst_31 = arith.constant dense<0.000000e+00> : vector<2x8x8xf32>
    %106 = tpu.matmul %101, %103, %cst_31 {dimension_numbers = #tpu.dot_dimension_numbers<[2], [2], [1], [1], [0, 0, 0, 1, 1, 1], [0], [0]>} : vector<2x8x32xbf16>, vector<2x8x32xbf16>, vector<2x8x8xf32> -> vector<2x8x8xf32>
    "tpu.trace_stop"() : () -> ()
    %cst_32 = arith.constant 0.176776692 : f32
    %107 = vector.broadcast %cst_32 : f32 to vector<2x8x8xf32>
    %108 = arith.mulf %106, %107 : vector<2x8x8xf32>
    %cst_33 = arith.constant dense<0xFF800000> : vector<2x8xf32>
    %109 = vector.multi_reduction <maximumf>, %108, %cst_33 [2] : vector<2x8x8xf32> to vector<2x8xf32>
    %110 = vector.shape_cast %109 : vector<2x8xf32> to vector<2x8x1xf32>
    %111 = vector.broadcast %110 : vector<2x8x1xf32> to vector<2x8x8xf32>
    %112 = arith.subf %108, %111 : vector<2x8x8xf32>
    %113 = math.exp %112 : vector<2x8x8xf32>
    %cst_34 = arith.constant dense<0.000000e+00> : vector<2x8xf32>
    %114 = vector.multi_reduction <add>, %113, %cst_34 [2] : vector<2x8x8xf32> to vector<2x8xf32>
    %115 = vector.shape_cast %114 : vector<2x8xf32> to vector<2x8x1xf32>
    %116 = vector.broadcast %115 : vector<2x8x1xf32> to vector<2x8x8xf32>
    %117 = arith.divf %113, %116 : vector<2x8x8xf32>
    %118 = arith.truncf %117 : vector<2x8x8xf32> to vector<2x8x8xbf16>
    "tpu.trace_start"() <{level = 10 : i32, message = "bqk,bkd->bqd"}> : () -> ()
    %cst_35 = arith.constant dense<0.000000e+00> : vector<2x8x32xf32>
    %119 = tpu.matmul %118, %105, %cst_35 {dimension_numbers = #tpu.dot_dimension_numbers<[2], [1], [1], [2], [0, 0, 0, 1, 1, 2], [0], [0]>} : vector<2x8x8xbf16>, vector<2x8x32xbf16>, vector<2x8x32xf32> -> vector<2x8x32xf32>
    "tpu.trace_stop"() : () -> ()
    %120 = vector.shape_cast %119 : vector<2x8x32xf32> to vector<16x32xf32>
    %121 = arith.truncf %120 : vector<16x32xf32> to vector<16x32xbf16>
    %122 = vector.extract_strided_slice %23 {offsets = [96, 0], sizes = [32, 128], strides = [1, 1]} : vector<128x128xbf16> to vector<32x128xbf16>
    %cst_36 = arith.constant dense<0.000000e+00> : vector<16x128xf32>
    %123 = tpu.matmul %121, %122, %cst_36 {dimension_numbers = #tpu.dot_dimension_numbers<[1], [0], [0], [1], [0, 0, 1, 1], [], []>} : vector<16x32xbf16>, vector<32x128xbf16>, vector<16x128xf32> -> vector<16x128xf32>
    %124 = arith.addf %99, %123 : vector<16x128xf32>
    %125 = arith.addf %14, %124 : vector<16x128xf32>
    %126 = vector.broadcast %6 : vector<1x128xf32> to vector<16x128xf32>
    %127 = arith.addf %125, %126 : vector<16x128xf32>
    %cst_37 = arith.constant dense<0.000000e+00> : vector<16xf32>
    %128 = vector.multi_reduction <add>, %127, %cst_37 [1] : vector<16x128xf32> to vector<16xf32>
    %129 = vector.shape_cast %128 : vector<16xf32> to vector<16x1xf32>
    %cst_38 = arith.constant 1.280000e+02 : f32
    %130 = vector.broadcast %cst_38 : f32 to vector<16x1xf32>
    %131 = arith.divf %129, %130 : vector<16x1xf32>
    %132 = vector.broadcast %131 : vector<16x1xf32> to vector<16x128xf32>
    %133 = arith.subf %127, %132 : vector<16x128xf32>
    %134 = arith.mulf %133, %133 : vector<16x128xf32>
    %cst_39 = arith.constant dense<0.000000e+00> : vector<16xf32>
    %135 = vector.multi_reduction <add>, %134, %cst_39 [1] : vector<16x128xf32> to vector<16xf32>
    %136 = vector.shape_cast %135 : vector<16xf32> to vector<16x1xf32>
    %cst_40 = arith.constant 1.280000e+02 : f32
    %137 = vector.broadcast %cst_40 : f32 to vector<16x1xf32>
    %138 = arith.divf %136, %137 : vector<16x1xf32>
    %cst_41 = arith.constant 9.99999974E-6 : f32
    %139 = vector.broadcast %cst_41 : f32 to vector<16x1xf32>
    %140 = arith.addf %138, %139 : vector<16x1xf32>
    %141 = math.rsqrt %140 : vector<16x1xf32>
    %142 = vector.broadcast %141 : vector<16x1xf32> to vector<16x128xf32>
    %143 = arith.mulf %133, %142 : vector<16x128xf32>
    %144 = vector.broadcast %7 : vector<1x128xf32> to vector<16x128xf32>
    %145 = arith.mulf %143, %144 : vector<16x128xf32>
    %146 = vector.broadcast %8 : vector<1x128xf32> to vector<16x128xf32>
    %147 = arith.addf %145, %146 : vector<16x128xf32>
    %148 = arith.truncf %147 : vector<16x128xf32> to vector<16x128xbf16>
    %c0_42 = arith.constant 0 : index
    %c0_43 = arith.constant 0 : index
    %c0_44 = arith.constant 0 : index
    %149 = vector.load %arg6[%c0_42, %c0_43, %c0_44] : memref<1x128x256xbf16, #tpu.memory_space<vmem>>, vector<1x128x256xbf16>
    %150 = vector.shape_cast %149 : vector<1x128x256xbf16> to vector<128x256xbf16>
    %cst_45 = arith.constant dense<0.000000e+00> : vector<16x256xf32>
    %151 = tpu.matmul %148, %150, %cst_45 {dimension_numbers = #tpu.dot_dimension_numbers<[1], [0], [0], [1], [0, 0, 1, 1], [], []>} : vector<16x128xbf16>, vector<128x256xbf16>, vector<16x256xf32> -> vector<16x256xf32>
    %152 = vector.broadcast %9 : vector<1x256xf32> to vector<16x256xf32>
    %153 = arith.addf %151, %152 : vector<16x256xf32>
    %cst_46 = arith.constant 0.000000e+00 : f32
    %154 = vector.broadcast %cst_46 : f32 to vector<16x256xf32>
    %155 = arith.maximumf %153, %154 : vector<16x256xf32>
    %156 = arith.truncf %155 : vector<16x256xf32> to vector<16x256xbf16>
    %c0_47 = arith.constant 0 : index
    %c0_48 = arith.constant 0 : index
    %c0_49 = arith.constant 0 : index
    %157 = vector.load %arg7[%c0_47, %c0_48, %c0_49] : memref<1x256x128xbf16, #tpu.memory_space<vmem>>, vector<1x256x128xbf16>
    %158 = vector.shape_cast %157 : vector<1x256x128xbf16> to vector<256x128xbf16>
    %cst_50 = arith.constant dense<0.000000e+00> : vector<16x128xf32>
    %159 = tpu.matmul %156, %158, %cst_50 {dimension_numbers = #tpu.dot_dimension_numbers<[1], [0], [0], [1], [0, 0, 1, 1], [], []>} : vector<16x256xbf16>, vector<256x128xbf16>, vector<16x128xf32> -> vector<16x128xf32>
    %160 = vector.broadcast %10 : vector<1x128xf32> to vector<16x128xf32>
    %161 = arith.addf %159, %160 : vector<16x128xf32>
    %162 = arith.addf %147, %161 : vector<16x128xf32>
    %cst_51 = arith.constant dense<0.000000e+00> : vector<16xf32>
    %163 = vector.multi_reduction <add>, %162, %cst_51 [1] : vector<16x128xf32> to vector<16xf32>
    %164 = vector.shape_cast %163 : vector<16xf32> to vector<16x1xf32>
    %cst_52 = arith.constant 1.280000e+02 : f32
    %165 = vector.broadcast %cst_52 : f32 to vector<16x1xf32>
    %166 = arith.divf %164, %165 : vector<16x1xf32>
    %167 = vector.broadcast %166 : vector<16x1xf32> to vector<16x128xf32>
    %168 = arith.subf %162, %167 : vector<16x128xf32>
    %169 = arith.mulf %168, %168 : vector<16x128xf32>
    %cst_53 = arith.constant dense<0.000000e+00> : vector<16xf32>
    %170 = vector.multi_reduction <add>, %169, %cst_53 [1] : vector<16x128xf32> to vector<16xf32>
    %171 = vector.shape_cast %170 : vector<16xf32> to vector<16x1xf32>
    %cst_54 = arith.constant 1.280000e+02 : f32
    %172 = vector.broadcast %cst_54 : f32 to vector<16x1xf32>
    %173 = arith.divf %171, %172 : vector<16x1xf32>
    %cst_55 = arith.constant 9.99999974E-6 : f32
    %174 = vector.broadcast %cst_55 : f32 to vector<16x1xf32>
    %175 = arith.addf %173, %174 : vector<16x1xf32>
    %176 = math.rsqrt %175 : vector<16x1xf32>
    %177 = vector.broadcast %176 : vector<16x1xf32> to vector<16x128xf32>
    %178 = arith.mulf %168, %177 : vector<16x128xf32>
    %179 = vector.broadcast %11 : vector<1x128xf32> to vector<16x128xf32>
    %180 = arith.mulf %178, %179 : vector<16x128xf32>
    %181 = vector.broadcast %12 : vector<1x128xf32> to vector<16x128xf32>
    %182 = arith.addf %180, %181 : vector<16x128xf32>
    %183 = vector.shape_cast %182 : vector<16x128xf32> to vector<2x8x128xf32>
    %c0_56 = arith.constant 0 : index
    %c0_57 = arith.constant 0 : index
    %c0_58 = arith.constant 0 : index
    %184 = vector.load %arg10[%c0_56, %c0_57, %c0_58] : memref<2x8x128xf32, #tpu.memory_space<vmem>>, vector<2x8x128xf32>
    tpu.vector_store %arg10[%c0_56, %c0_57, %c0_58], %183 {strides = array<i32>} : memref<2x8x128xf32, #tpu.memory_space<vmem>>, vector<2x8x128xf32>,
    %c1_i32 = arith.constant 1 : i32
    %185 = arith.cmpi eq, %arg1, %c1_i32 : i32
    %186 = arith.extui %185 : i1 to i32
    %c0_i32_59 = arith.constant 0 : i32
    %187 = arith.cmpi ne, %186, %c0_i32_59 : i32
    scf.if %187 {
      %c0_60 = arith.constant 0 : index
      %c0_61 = arith.constant 0 : index
      %c0_62 = arith.constant 0 : index
      %188 = vector.load %arg10[%c0_60, %c0_61, %c0_62] : memref<2x8x128xf32, #tpu.memory_space<vmem>>, vector<2x8x128xf32>
      %c0_63 = arith.constant 0 : index
      %c0_64 = arith.constant 0 : index
      %c0_65 = arith.constant 0 : index
      %189 = vector.load %arg2[%c0_63, %c0_64, %c0_65] : memref<2x8x128xf32, #tpu.memory_space<vmem>>, vector<2x8x128xf32>
      %190 = arith.addf %188, %189 : vector<2x8x128xf32>
      %c0_66 = arith.constant 0 : index
      %c0_67 = arith.constant 0 : index
      %c0_68 = arith.constant 0 : index
      %191 = vector.load %arg9[%c0_66, %c0_67, %c0_68] : memref<2x8x128xf32, #tpu.memory_space<vmem>>, vector<2x8x128xf32>
      tpu.vector_store %arg9[%c0_66, %c0_67, %c0_68], %190 {strides = array<i32>} : memref<2x8x128xf32, #tpu.memory_space<vmem>>, vector<2x8x128xf32>,
    } else {
    }
    return
  }
  func.func @transform_0(%arg0: i32, %arg1: i32) -> (i32, i32, i32) {
    %c0_i32 = arith.constant 0 : i32
    %c0_i32_0 = arith.constant 0 : i32
    %c0_i32_1 = arith.constant 0 : i32
    return %arg0, %c0_i32, %c0_i32_0 : i32, i32, i32
  }
  func.func @transform_1(%arg0: i32, %arg1: i32) -> (i32, i32) {
    %c0_i32 = arith.constant 0 : i32
    %c0_i32_0 = arith.constant 0 : i32
    %c0_i32_1 = arith.constant 0 : i32
    return %c0_i32, %c0_i32_0 : i32, i32
  }
  func.func @transform_2(%arg0: i32, %arg1: i32) -> (i32, i32, i32) {
    %c0_i32 = arith.constant 0 : i32
    %c0_i32_0 = arith.constant 0 : i32
    %c0_i32_1 = arith.constant 0 : i32
    return %arg1, %c0_i32, %c0_i32_0 : i32, i32, i32
  }
  func.func @transform_3(%arg0: i32, %arg1: i32) -> (i32, i32, i32) {
    %c0_i32 = arith.constant 0 : i32
    %c0_i32_0 = arith.constant 0 : i32
    %c0_i32_1 = arith.constant 0 : i32
    return %arg1, %c0_i32, %c0_i32_0 : i32, i32, i32
  }
  func.func @transform_4(%arg0: i32, %arg1: i32) -> (i32, i32, i32) {
    %c0_i32 = arith.constant 0 : i32
    %c0_i32_0 = arith.constant 0 : i32
    %c0_i32_1 = arith.constant 0 : i32
    return %arg1, %c0_i32, %c0_i32_0 : i32, i32, i32
  }
  func.func @transform_5(%arg0: i32, %arg1: i32) -> (i32, i32, i32) {
    %c0_i32 = arith.constant 0 : i32
    %c0_i32_0 = arith.constant 0 : i32
    %c0_i32_1 = arith.constant 0 : i32
    return %arg1, %c0_i32, %c0_i32_0 : i32, i32, i32
  }
  func.func @transform_6(%arg0: i32, %arg1: i32) -> (i32, i32, i32) {
    %c0_i32 = arith.constant 0 : i32
    %c0_i32_0 = arith.constant 0 : i32
    %c0_i32_1 = arith.constant 0 : i32
    return %arg1, %c0_i32, %c0_i32_0 : i32, i32, i32
  }
  func.func @transform_7(%arg0: i32, %arg1: i32) -> (i32, i32, i32) {
    %c0_i32 = arith.constant 0 : i32
    %c0_i32_0 = arith.constant 0 : i32
    %c0_i32_1 = arith.constant 0 : i32
    return %arg0, %c0_i32, %c0_i32_0 : i32, i32, i32
  }
}

</mosaic_0001>

<bundles_post_ra>
// kernel: vibet_temporal_encoder.1
= control target key start
LH: loop header
LB: loop body
LE: loop exit
PB: predicated region body
PF: predicated region fallthrough
CT: control target
= control target key end

     0   :  { %s4235_s0 = inlined_call_operand.hbm [shape: f32[4,8,128], index: 0, kind: input, shape index: {}]   ;;  %s4236_s1 = inlined_call_operand.hbm [shape: f32[8,128], index: 1, kind: input, shape index: {}]   ;;  %s4237_s2 = inlined_call_operand.hbm [shape: bf16[2,128,384], index: 2, kind: input, shape index: {}]   ;;  %s4238_s3 = inlined_call_operand.hbm [shape: bf16[2,128,128], index: 3, kind: input, shape index: {}]   ;;  %s4239_s4 = inlined_call_operand.hbm [shape: bf16[2,128,256], index: 4, kind: input, shape index: {}]   ;;  %s4240_s5 = inlined_call_operand.hbm [shape: bf16[2,256,128], index: 5, kind: input, shape index: {}]   ;;  %s4241_s6 = inlined_call_operand.hbm [shape: f32[2,8,384], index: 6, kind: input, shape index: {}]   ;;  %s4242_s7 = inlined_call_operand.hbm [shape: f32[4,8,128], index: 7, kind: output, shape index: {}]  }
   0x1   :  { %4256 = sst [smem:[#allocation26_spill]] %s4235_s0 }
   0x2   :  { %4257 = sst [smem:[#allocation27_spill]] %s4236_s1 }
   0x3   :  { %4258 = sst [smem:[#allocation28_spill]] %s4237_s2 }
   0x4   :  { %4259 = sst [smem:[#allocation29_spill]] %s4242_s7 }
   0x5   :  { %12 = vsyncpa [#allocation4], 0 }
   0x6   :  { %14 = vsyncpa [#allocation4 + $0x1], 0 }
   0x7   :  { %15 = vsyncpa [#allocation7], 0 }
   0x8   :  { %16 = vsyncpa [#allocation5], 0 }
   0x9   :  { %18 = vsyncpa [#allocation5 + $0x1], 0  ;;  %s3558_s24 = smov 0   ;;  %s3560_s25 = smov 0  }
   0xa   :  { %s3562_s26 = smov 0   ;;  %s3564_s27 = smov 0  }
   0xb   :  { %s3566_s28 = smov 0   ;;  %s3568_s29 = smov 0  }
   0xc   :  { %s3570_s30 = smov 0   ;;  %s3572_s8 = smov 0  }
   0xd   :  { %s3574_s9 = smov 0   ;;  %s3576_s10 = smov 0  }
   0xe   :  { %s3578_s11 = smov 0  }
   0xf LB: > { %4260 = sst [smem:[#allocation18_spill]] %s3462_s26  ;;  %s33_s12 = sadd.s32 1, %s3486_s9  ;;  %s3494_s11 = sphi %s3578_s11, %s24_s11   ;;  %s3490_s10 = sphi %s3576_s10, %s4301_s10   ;;  %s3486_s9 = sphi %s3574_s9, %s4308_s9   ;;  %s3482_s8 = sphi %s3572_s8, %s4299_s8   ;;  %s3478_s30 = sphi %s3570_s30, %s4307_s30   ;;  %s3474_s29 = sphi %s3568_s29, %s4306_s29   ;;  %s3470_s28 = sphi %s3566_s28, %s4305_s28   ;;  %s3466_s27 = sphi %s3564_s27, %s4304_s27   ;;  %s3462_s26 = sphi %s3562_s26, %s4297_s26   ;;  %s3458_s25 = sphi %s3560_s25, %s4303_s25   ;;  %s3454_s24 = sphi %s3558_s24, %s4302_s24  }
  0x10   : > { %4261 = sst [smem:[#allocation19_spill]] %s3478_s30  ;;  %s36_s13 = sadd.s32 1, %s3490_s10 }
  0x11   : > { %4262 = sst [smem:[#allocation20_spill]] %s3482_s8  ;;  %p34_p0 = scmp.ge.s32.totalorder %s33_s12, 2 }
  0x12   : > { %4263 = sst [smem:[#allocation21_spill]] %s3490_s10  ;;  %s43_s14 = sadd.s32 1, %s3474_s29 }
  0x13   : > { %p50_p1 = scmp.ne.s32.totalorder %s3474_s29, %s3470_s28  ;;  %p51_p2 = scmp.eq.s32.totalorder %s3494_s11, 0 }
  0x14   : > { %s4310_s12 = smov (%p34_p0, %s33_s12), 0  ;;  %s4312_s13 = smov (!%p34_p0, %s36_s13), %s3490_s10 }
  0x15   : > { %4264 = sst [smem:[#allocation22_spill]] %s4310_s12  ;;  %p3627_p3 = por %p51_p2, %p50_p1 }
  0x16   : > { %s87_s16 = ssub.s32 %s3486_s9, %s4310_s12  ;;  %p38_p4 = scmp.ge.s32.totalorder %s4312_s13, 2 }
  0x17   : > { %p3633_p5 = scmp.eq.s32.totalorder %s87_s16, 0  ;;  %p2945_p6 = scmp.lt.s32.totalorder %s3494_s11, 4 }
  0x18   : > { %s4314_s13 = smov (%p38_p4, %s4312_s13), 0  ;;  %s268_s18 = sand.u32 1, %s3494_s11  }
  0x19   : > { %4267 = sst [smem:[#allocation23_spill]] %s4314_s13  ;;  %s270_s19 = sand.u32 1, %s3474_s29  }
  0x1a   : > { %s40_s20 = ssub.s32 %s3490_s10, %s4314_s13  ;;  %s2553_s21 = sshll.u32 %s270_s19, 4 }
  0x1b   : > { %p41_p7 = scmp.eq.s32.totalorder %s40_s20, 0  ;;  %s2665_s22 = sshll.u32 %s3490_s10, 8 }
  0x1c   : > { %s4269_s0 = sld [smem:[#allocation26_spill]]  ;;  %s272_s16 = scalar_lea.vmem [#allocation3], %s2553_s21 }
  0x1d   : > { %s3646_s23 = scalar_select %p41_p7, %s3474_s29, %s43_s14  }
  0x1e   : > { %s279_s30 = sshll.u32 %s272_s16, 4  ;;  %p3655_p8 = pnand %p2945_p6, %p3627_p3  ;;  %s280_s30 = int_to_ptr.vmem [resolvable:$true] %s279_s30 }
  0x1f   : > { %4268 = sst [smem:[#allocation24_spill]] %s3646_s23  ;;  %s3659_s13 = scalar_lea.sflag [#allocation4], %s268_s18 }
  0x20   : > { %p3174_p9 = pneg %p3655_p8  ;;  %s3185_s14 = scalar_lea.vmem %s280_s30, 256 }
  0x21   : > { %p3186_p10 = scmp.ne.s32.totalorder %s280_s30, %s3185_s14  ;;  %s3496_s7 = smov [#allocation3]  }
  0x22   : > { %s278_s8 = scalar_lea.hbm %s4269_s0, %s2665_s22  ;;  %s3190_s12 = sshll.u32 %s3496_s7, 4  ;;  %s3191_s12 = int_to_ptr.vmem [resolvable:$false] %s3190_s12 }
  0x23   : > { %p3188_p11 = pnand %p3186_p10, %p3174_p9  ;;  %s3192_s19 = scalar_lea.vmem %s3191_s12, 512 }
  0x24   : > { %p3193_p13 = scmp.lt.s32.totalorder %s280_s30, %s3191_s12  ;;  %p3194_p0 = scmp.lt.s32.totalorder %s3192_s19, %s3185_s14 }
  0x25   : > { %p3189_p12 = pneg %p3188_p11 }
  0x26   : > { %p3195_p4 = por %p3194_p0, %p3193_p13 }
  0x28   : > { %p3196_p3 = pnand %p3195_p4, %p3189_p12 }
  0x2a   : > { %3199 = shalt.err (!%p3196_p3)
}
  0x2b   : > { %s4246_s15 = smov 128   ;;  %s4247_s18 = smov 8  }
  0x2c   : > { %2924 = dma.hbm_to_vmem [thread:$0]  (!%p3655_p8), %s278_s8, 256, %s280_s30, %s3659_s13, %s4246_s15, %s4246_s15, %s4247_s18  }
  0x2d   : > { %s2894_s20 = smul.u32 3072, %s3486_s9  ;;  %s90_s21 = sadd.s32 1, %s3462_s26 }
  0x2e   : > { %p97_p7 = scmp.ne.s32.totalorder %s3462_s26, %s3458_s25  ;;  %s3681_s16 = sand.u32 1, %s3462_s26  }
  0x2f   : > { %s3676_s22 = scalar_select %p3633_p5, %s3462_s26, %s90_s21  }
  0x30   : > { %p99_p9 = por %p97_p7, %p51_p2  ;;  %s2893_s14 = smul.u32 192, %s3681_s16 }
  0x31   : > { %4271 = sst [smem:[#allocation25_spill]] %s3676_s22  ;;  %s2557_s19 = sshll.u32 %s3681_s16, 6 }
  0x32   : > { %s4272_s2 = sld [smem:[#allocation28_spill]]  ;;  %p3689_p10 = pnand %p2945_p6, %p99_p9 }
  0x33   : > { %s293_s8 = scalar_lea.vmem [#allocation8], %s2893_s14 }
  0x34   : > { %s4273_s30 = scalar_select %p3689_p10, 1, 0 }
  0x35   : > { %s300_s17 = sshll.u32 %s293_s8, 4  ;;  %p3696_p2 = pneg %p3689_p10  ;;  %s301_s17 = int_to_ptr.vmem [resolvable:$true] %s300_s17 }
  0x36   : > { %s3213_s15 = scalar_lea.vmem %s301_s17, 3072 }
  0x37   : > { %p3214_p5 = scmp.ne.s32.totalorder %s301_s17, %s3213_s15 }
  0x38   : > { %s299_s1 = scalar_lea.hbm %s4272_s2, %s2894_s20  ;;  %s3499_s20 = smov [#allocation8]  }
  0x39   : > { %p3216_p8 = pnand %p3214_p5, %p3696_p2  ;;  %s3218_s7 = sshll.u32 %s3499_s20, 4  ;;  %s3219_s7 = int_to_ptr.vmem [resolvable:$false] %s3218_s7 }
  0x3a   : > { %s3220_s12 = scalar_lea.vmem %s3219_s7, 6144  ;;  %p3221_p6 = scmp.lt.s32.totalorder %s301_s17, %s3219_s7 }
  0x3b   : > { %p3217_p11 = pneg %p3216_p8  ;;  %p3222_p12 = scmp.lt.s32.totalorder %s3220_s12, %s3213_s15 }
  0x3d   : > { %p3223_p13 = por %p3222_p12, %p3221_p6 }
  0x3f   : > { %p3224_p0 = pnand %p3223_p13, %p3217_p11 }
  0x41   : > { %3227 = shalt.err (!%p3224_p0)
}
  0x42   : > { %s3500_s14 = smov 192   ;;  %s3501_s8 = smov 12  }
  0x43   : > { %2927 = dma.hbm_to_vmem [thread:$0]  (!%p3689_p10), %s299_s1, 3072, %s301_s17, %s3659_s13, %s3500_s14, %s3500_s14, %s3501_s8  }
  0x44   : > { %s2666_s18 = sshll.u32 %s3486_s9, 10  ;;  %s314_s10 = scalar_lea.vmem [#allocation9], %s2557_s19 }
  0x45   : > { %s320_s20 = scalar_lea.hbm %s4238_s3, %s2666_s18  ;;  %s321_s7 = sshll.u32 %s314_s10, 4  ;;  %s322_s7 = int_to_ptr.vmem [resolvable:$true] %s321_s7 }
  0x46   : > { %s2560_s15 = sshll.u32 %s3681_s16, 7  ;;  %s3241_s12 = scalar_lea.vmem %s322_s7, 1024 }
  0x47   : > { %p3242_p4 = scmp.ne.s32.totalorder %s322_s7, %s3241_s12  ;;  %s3502_s23 = smov [#allocation9]  }
  0x48   : > { %s3246_s22 = sshll.u32 %s3502_s23, 4  ;;  %s3247_s22 = int_to_ptr.vmem [resolvable:$false] %s3246_s22 }
  0x49   : > { %p3244_p3 = pnand %p3242_p4, %p3696_p2  ;;  %s3248_s26 = scalar_lea.vmem %s3247_s22, 2048 }
  0x4a   : > { %p3249_p9 = scmp.lt.s32.totalorder %s322_s7, %s3247_s22  ;;  %p3250_p5 = scmp.lt.s32.totalorder %s3248_s26, %s3241_s12 }
  0x4b   : > { %p3245_p7 = pneg %p3244_p3 }
  0x4c   : > { %p3251_p8 = por %p3250_p5, %p3249_p9 }
  0x4e   : > { %p3252_p11 = pnand %p3251_p8, %p3245_p7 }
  0x50   : > { %3255 = shalt.err (!%p3252_p11)
}
  0x51   : > { %s4250_s0 = smov 64   ;;  %s3504_s2 = smov 4  }
  0x52   : > { %2930 = dma.hbm_to_vmem [thread:$0]  (!%p3689_p10), %s320_s20, 1024, %s322_s7, %s3659_s13, %s4250_s0, %s4250_s0, %s3504_s2  }
  0x53   : > { %s2667_s10 = sshll.u32 %s3486_s9, 11  ;;  %s335_s22 = scalar_lea.vmem [#allocation10], %s2560_s15 }
  0x54   : > { %s341_s26 = scalar_lea.hbm %s4239_s4, %s2667_s10  ;;  %s342_s1 = sshll.u32 %s335_s22, 4  ;;  %s343_s1 = int_to_ptr.vmem [resolvable:$true] %s342_s1 }
  0x55   : > { %s3269_s17 = scalar_lea.vmem %s343_s1, 2048  ;;  %s3505_s19 = smov [#allocation10]  }
  0x56   : > { %p3270_p6 = scmp.ne.s32.totalorder %s343_s1, %s3269_s17  ;;  %s3274_s14 = sshll.u32 %s3505_s19, 4  ;;  %s3275_s14 = int_to_ptr.vmem [resolvable:$false] %s3274_s14 }
  0x57   : > { %s3276_s8 = scalar_lea.vmem %s3275_s14, 4096  ;;  %p3277_p0 = scmp.lt.s32.totalorder %s343_s1, %s3275_s14 }
  0x58   : > { %p3272_p12 = pnand %p3270_p6, %p3696_p2  ;;  %p3278_p4 = scmp.lt.s32.totalorder %s3276_s8, %s3269_s17 }
  0x5a   : > { %p3273_p13 = pneg %p3272_p12  ;;  %p3279_p3 = por %p3278_p4, %p3277_p0 }
  0x5c   : > { %p3280_p7 = pnand %p3279_p3, %p3273_p13 }
  0x5e   : > { %3283 = shalt.err (!%p3280_p7)
}
  0x5f   : > { %s4275_s20 = smov 8   ;;  %s4276_s7 = smov 128  }
  0x60   : > { %2933 = dma.hbm_to_vmem [thread:$0]  (!%p3689_p10), %s341_s26, 2048, %s343_s1, %s3659_s13, %s4276_s7, %s4276_s7, %s4275_s20  }
  0x61   : > { %s362_s18 = scalar_lea.hbm %s4240_s5, %s2667_s10  ;;  %s356_s22 = scalar_lea.vmem [#allocation11], %s2560_s15 }
  0x62   : > { %s363_s19 = sshll.u32 %s356_s22, 4  ;;  %s3506_s14 = smov [#allocation11]   ;;  %s364_s19 = int_to_ptr.vmem [resolvable:$true] %s363_s19 }
  0x63   : > { %s3297_s17 = scalar_lea.vmem %s364_s19, 2048  ;;  %s3302_s8 = sshll.u32 %s3506_s14, 4  ;;  %s3303_s8 = int_to_ptr.vmem [resolvable:$false] %s3302_s8 }
  0x64   : > { %p3298_p9 = scmp.ne.s32.totalorder %s364_s19, %s3297_s17  ;;  %s3304_s0 = scalar_lea.vmem %s3303_s8, 4096 }
  0x65   : > { %p3305_p11 = scmp.lt.s32.totalorder %s364_s19, %s3303_s8  ;;  %p3306_p6 = scmp.lt.s32.totalorder %s3304_s0, %s3297_s17 }
  0x66   : > { %p3300_p5 = pnand %p3298_p9, %p3696_p2 }
  0x67   : > { %p3307_p12 = por %p3306_p6, %p3305_p11 }
  0x68   : > { %p3301_p8 = pneg %p3300_p5 }
  0x6a   : > { %p3308_p13 = pnand %p3307_p12, %p3301_p8 }
  0x6c   : > { %3311 = shalt.err (!%p3308_p13)
}
  0x6d   : > { %s4277_s15 = smov 64   ;;  %s3746_s0 = sadd.s32 4294967295, %s3494_s11  }
  0x6e   : > { %2936 = dma.hbm_to_vmem [thread:$0]  (!%p3689_p10), %s362_s18, 2048, %s364_s19, %s3659_s13, %s4277_s15, %s4277_s15, %s3504_s2  }
  0x6f   : > { %s2549_s10 = sadd.s32 4294967294, %s3494_s11   ;;  %p56_p0 = scmp.ne.s32.totalorder %s3470_s28, %s3466_s27 }
  0x70   : > { %p4252_p4 = scmp.eq.s32.totalorder %s3746_s0, 0  ;;  %p103_p3 = scmp.ne.s32.totalorder %s3458_s25, %s3454_s24 }
  0x71   : > { %p231_p7 = scmp.eq.s32.totalorder %s3746_s0, 3  ;;  %p237_p9 = scmp.eq.s32.totalorder %s2549_s10, 3 }
  0x72   : > { %p3757_p5 = por %p4252_p4, %p56_p0  ;;  %p3763_p8 = por %p103_p3, %p4252_p4 }
  0x73   : > { %p3770_p11 = por %p231_p7, %p50_p1  ;;  %p3774_p6 = por %p237_p9, %p56_p0 }
  0x74   : > { %s4278_s26 = scalar_select %p3757_p5, 1, 0 }
  0x75   : > { %s4279_s2 = scalar_select %p3763_p8, 1, 0 }
  0x76   : > { %s4280_s1 = scalar_select %p3770_p11, 1, 0 }
  0x77   : > { %s4281_s24 = scalar_select %p3774_p6, 1, 0 }
  0x78   : > { %p2550_p12 = scmp.ge.s32.totalorder %s3494_s11, 1  ;;  %p244_p13 = scmp.lt.s32.totalorder %s3494_s11, 5 }
  0x79   : > { %s3507_s7 = smov [#allocation6]   ;;  %s2895_s23 = smul.u32 24, %s3681_s16 }
  0x7a   : > { %p3780_p10 = pnand %p2550_p12, %p244_p13  ;;  %s257_s12 = sshll.u32 %s3507_s7, 4  ;;  %s258_s12 = int_to_ptr.vmem [resolvable:$true] %s257_s12 }
  0x7b   : > { %s2896_s18 = smul.u32 384, %s3486_s9  ;;  %s377_s8 = scalar_lea.vmem [#allocation12], %s2895_s23 }
  0x7c   : > { %p2917_p3 = pneg %p3780_p10  ;;  %s385_s15 = sshll.u32 %s377_s8, 4  ;;  %s386_s15 = int_to_ptr.vmem [resolvable:$true] %s385_s15 }
  0x7d   : > { %s3797_s14 = scalar_lea.hbm %s4241_s6, %s2896_s18  ;;  %s3323_s16 = scalar_lea.vmem %s258_s12, 128 }
  0x7e   : > { %p3790_p1 = pnand %p2917_p3, %p4252_p4  ;;  %p3324_p7 = scmp.ne.s32.totalorder %s258_s12, %s3323_s16 }
  0x7f   : > { %p3331_p13 = scmp.lt.s32.totalorder %s258_s12, %s258_s12  ;;  %p3332_p3 = scmp.lt.s32.totalorder %s3323_s16, %s3323_s16 }
  0x80   : > { %p3314_p0 = pneg %p3790_p1 }
  0x81   : > { %p3333_p4 = por %p3332_p3, %p3331_p13 }
  0x82   : > { %p3326_p9 = pnand %p3324_p7, %p3314_p0 }
  0x84   : > { %p3327_p12 = pneg %p3326_p9 }
  0x86   : > { %p3334_p6 = pnand %p3333_p4, %p3327_p12 }
  0x88   : > { %3337 = shalt.err (!%p3334_p6)
}
  0x89   : > { %s4284_s18 = sld [smem:[#allocation27_spill]]  ;;  %s3351_s23 = scalar_lea.vmem %s386_s15, 384 }
  0x8a   : > { %p3352_p11 = scmp.ne.s32.totalorder %s386_s15, %s3351_s23  ;;  %s3508_s19 = smov [#allocation12]  }
  0x8b   : > { %s3356_s17 = sshll.u32 %s3508_s19, 4  ;;  %s3357_s17 = int_to_ptr.vmem [resolvable:$false] %s3356_s17 }
  0x8c   : > { %p3354_p8 = pnand %p3352_p11, %p3696_p2  ;;  %s3358_s8 = scalar_lea.vmem %s3357_s17, 768 }
  0x8d   : > { %p3359_p0 = scmp.lt.s32.totalorder %s386_s15, %s3357_s17  ;;  %p3360_p7 = scmp.lt.s32.totalorder %s3358_s8, %s3351_s23 }
  0x8e   : > { %p3355_p5 = pneg %p3354_p8 }
  0x8f   : > { %2920 = dma.hbm_to_vmem [thread:$0]  (!%p3790_p1), %s4284_s18, 128, %s258_s12, [#allocation7]  }
  0x90   : > { %p3361_p4 = por %p3360_p7, %p3359_p0 }
  0x92   : > { %p3362_p6 = pnand %p3361_p4, %p3355_p5 }
  0x94   : > { %3365 = shalt.err (!%p3362_p6)
}
  0x95   : > { %p4285_p9 = scmp.ne.s32.totalorder %s4273_s30, 0  ;;  %394 = sbr.rel (%p3780_p10) target bundleno = 4342 (0x10f6), region = 48 }
  0x96   : > { %s396_s21 = sand.u32 (!%p3780_p10), 1, %s3746_s0   ;;  %s398_s12 = sand.u32 (!%p3780_p10), 1, %s3470_s28  }
  0x97   : > { %2939 = dma.hbm_to_vmem [thread:$0]  (!%p4285_p9), %s3797_s14, 384, %s386_s15, %s3659_s13  }
  0x98   : > { %s2568_s22 = sshll.u32 (!%p3780_p10), %s398_s12, 4  ;;  %s397_s16 = scalar_lea.sflag (!%p3780_p10), [#allocation4], %s396_s21 }
  0x99   : > { %s3818_s10 = scalar_lea.vmem (!%p3780_p10), [#allocation3], %s2568_s22  ;;  %p4286_p2 = scmp.ne.s32.totalorder (!%p3780_p10), %s4278_s26, 0 }
  0x9b   : > { %3437 = dma.done.wait (%p4286_p2), %s397_s16, 256  }
  0x9c   : > { %3439 = vsyncadd (%p4286_p2), %s397_s16, 4294967040  ;;  %p4287_p5 = scmp.eq.s32.totalorder %s3746_s0, 0 }
  0x9e   : > { %3441 = dma.done.wait (%p4287_p5), [#allocation7], 128   ;;  %p4288_p10 = pmov %p4287_p5 }
  0x9f   : > { %s411_s13 = sand.u32 1, %s3458_s25   ;;  %p4289_p8 = scmp.ne.s32.totalorder %s4279_s2, 0 }
  0xa0   : > { %3443 = vsyncadd (%p4288_p10), [#allocation7], 4294967168  ;;  %s2897_s30 = smul.u32 192, %s411_s13 }
  0xa2   : > { %s3829_s20 = scalar_lea.vmem [#allocation8], %s2897_s30 }
  0xa3   : > { %3445 = dma.done.wait (%p4289_p8), %s397_s16, 8576  }
  0xa4   : > { %3447 = vsyncadd (%p4289_p8), %s397_s16, 4294958720  ;;  %s2570_s14 = sshll.u32 %s411_s13, 6  ;;  %s2571_s26 = sshll.u32 %s411_s13, 7 }
  0xa5   : > { %s2898_s15 = smul.u32 24, %s411_s13  ;;  %s3835_s7 = scalar_lea.vmem [#allocation9], %s2570_s14 }
  0xa6   : > { %s3837_s18 = scalar_lea.vmem [#allocation10], %s2571_s26  ;;  %s3839_s0 = scalar_lea.vmem [#allocation11], %s2571_s26 }
  0xa7   : > { %s3841_s23 = scalar_lea.vmem [#allocation12], %s2898_s15  ;;  %s3843_s19 = scalar_lea.vmem [#allocation13], %s2568_s22 }
  0xa8   : > { %s4290_s17 = sld [smem:[#allocation19_spill]] }
  0xae   : > { %p2574_p11 = scmp.ne.s32.totalorder %s4290_s17, 0 }
  0xb0   : > { %511 = sbr.rel (%p2574_p11) target bundleno = 186 (0xba), region = 80 }
  0xb5   : > { %v512_v0 = vld [vmem:[%s3818_s10] sm:$0xff]  ;;  %v513_v2 = vld [vmem:[%s3818_s10 + $0x8] sm:$0xff] }
  0xb6   : > { %v514_v1 = vld [vmem:[#allocation6] sm:$0xff] }
  0xb7   : > { %v515_v3 = vadd.f32 %v514_v1, %v512_v0  ;;  %v516_v4 = vadd.f32 %v514_v1, %v513_v2 }
  0xb9   : > { %517 = vst [vmem:[#allocation2] sm:$0xff] %v515_v3  ;;  %518 = vst [vmem:[#allocation2 + $0x8] sm:$0xff] %v516_v4 }
  0xba PF: > { %v3051_v5 = vld [vmem:[%s3829_s20 + $0xac] ss:$12 sps:$4 sm:$0xff]   ;;  %v3053_v6 = vld [vmem:[%s3829_s20 + $0xa8] ss:$12 sps:$4 sm:$0xff]   ;;  %v3509_v7 = vmov 0   ;;  %v3510_v8 = vmov 0.0   ;;  %v557_v34 = vlaneseq }
  0xbb   : > { %729 = vmatprep.mubr.bf16.mxu0 %v3509_v7  ;;  %2745 = vmatprep.subr.bf16.mxu1 %v3510_v8  ;;  %v3054_v9 = vld [vmem:[%s3829_s20 + $0x94] ss:$12 sps:$4 sm:$0xff]   ;;  %v3056_v10 = vld [vmem:[%s3829_s20 + $0x90] ss:$12 sps:$4 sm:$0xff]   ;;  %v3059_v12 = vld [vmem:[%s3829_s20 + $0x78] ss:$12 sps:$4 sm:$0xff]  }
  0xbc   : > { %697 = vmatprep.subr.bf16.mxu0 %v3051_v5  ;;  %v3057_v11 = vld [vmem:[%s3829_s20 + $0x7c] ss:$12 sps:$4 sm:$0xff]   ;;  %v3060_v13 = vld [vmem:[%s3829_s20 + $0x64] ss:$12 sps:$4 sm:$0xff]   ;;  %v3062_v14 = vld [vmem:[%s3829_s20 + $0x60] ss:$12 sps:$4 sm:$0xff]  }
  0xbd   : > { %698 = vmatpush1.bf16.msra.mxu0 %v3053_v6  ;;  %v3063_v15 = vld [vmem:[%s3829_s20 + $0x4c] ss:$12 sps:$4 sm:$0xff]   ;;  %v3075_v16 = vld [vmem:[%s3829_s20 + $0xb0] ss:$12 sps:$4 sm:$0xff]   ;;  %v3065_v18 = vld [vmem:[%s3829_s20 + $0x48] ss:$12 sps:$4 sm:$0xff]  }
  0xbe   : > { %699 = vmatprep.subr.bf16.mxu0 %v3054_v9  ;;  %2746 = vmatpush3.bf16.msra.mxu1 %v3075_v16  ;;  %v3076_v17 = vld [vmem:[%s3829_s20 + $0x98] ss:$12 sps:$4 sm:$0xff]   ;;  %v3066_v19 = vld [vmem:[%s3829_s20 + $0x34] ss:$12 sps:$4 sm:$0xff]   ;;  %v3068_v20 = vld [vmem:[%s3829_s20 + $0x30] ss:$12 sps:$4 sm:$0xff]  }
  0xbf   : > { %2747 = vmatprep.subr.bf16.mxu1 %v3510_v8  ;;  %v3069_v21 = vld [vmem:[%s3829_s20 + $0x1c] ss:$12 sps:$4 sm:$0xff]   ;;  %v3077_v22 = vld [vmem:[%s3829_s20 + $0x80] ss:$12 sps:$4 sm:$0xff]   ;;  %v3071_v24 = vld [vmem:[%s3829_s20 + $0x18] ss:$12 sps:$4 sm:$0xff]  }
  0xc0   : > { %v3078_v23 = vld [vmem:[%s3829_s20 + $0x68] ss:$12 sps:$4 sm:$0xff]   ;;  %v3072_v25 = vld [vmem:[%s3829_s20 + $0x4] ss:$12 sps:$4 sm:$0xff]   ;;  %v3074_v27 = vld [vmem:[%s3829_s20] ss:$12 sps:$4 sm:$0xff]  }
  0xc1   : > { %700 = vmatpush1.bf16.msra.mxu0 %v3056_v10  ;;  %v3079_v26 = vld [vmem:[%s3829_s20 + $0x50] ss:$12 sps:$4 sm:$0xff]   ;;  %v3874_v28 = vld [vmem:[#allocation2] sm:$0xff]  ;;  %v3080_v30 = vld [vmem:[%s3829_s20 + $0x38] ss:$12 sps:$4 sm:$0xff]   ;;  %vm3511_vm0 = vmmov 0  }
  0xc2   : > { %701 = vmatprep.subr.bf16.mxu0 %v3057_v11  ;;  %2748 = vmatpush3.bf16.msra.mxu1 %v3076_v17  ;;  %v3876_v29 = vld [vmem:[#allocation2 + $0x8] sm:$0xff]  ;;  %v3081_v32 = vld [vmem:[%s3829_s20 + $0x20] ss:$12 sps:$4 sm:$0xff]   ;;  %v3895_v35 = vshrl.u32 %v557_v34, 7  ;;  %vm803_vm1 = vcmask 261120   ;;  %s3512_s2 = smov 96  }
  0xc3   : > { %2749 = vmatprep.subr.bf16.mxu1 %v3510_v8  ;;  %v524_v31 = vpack.c.bf16 %v3876_v29, %v3874_v28  ;;  %v3082_v33 = vld [vmem:[%s3829_s20 + $0x8] ss:$12 sps:$4 sm:$0xff]   ;;  %2761 = vmatprep.mubr.msk.bf16.mxu1 %vm3511_vm0, %v3510_v8  ;;  %v3903_v40 = vld [vmem:[%s3841_s23] sm:$0xff]  ;;  %vm926_vm2 = vcmask 1043456   ;;  %vm898_vm3 = vcmask 64512   ;;  %s3513_s8 = smov 64  }
  0xc4   : > { %v3898_v36 = vld [vmem:[%s3841_s23 + $0x8] sm:$0xff]  ;;  %v559_v37 = vsub.s32 0, %v3895_v35  ;;  %v521_v55 = vld [vmem:[%s3841_s23 + $0x10] sm:$0xff]  ;;  %s3514_s21 = smov 32   ;;  %s4291_s22 = sld [smem:[#allocation19_spill]] }
  0xc5   : > { %702 = vmatpush1.bf16.msra.mxu0 %v3059_v12 }
  0xc6   : > { %703 = vmatprep.subr.bf16.mxu0 %v3060_v13  ;;  %2750 = vmatpush3.bf16.msra.mxu1 %v3077_v22  ;;  %v564_v38 = vrot.slane %v3898_v36, %v559_v37  ;;  %v560_v44 = vrot.slane %v3903_v40, %v559_v37  ;;  %v568_v56 = vrot.slane %v521_v55, %v559_v37 }
  0xc7   : > { %2751 = vmatprep.subr.bf16.mxu1 %v3510_v8 }
  0xc9   : > { %704 = vmatpush1.bf16.msra.mxu0 %v3062_v14 }
  0xca   : > { %705 = vmatprep.subr.bf16.mxu0 %v3063_v15  ;;  %2752 = vmatpush3.bf16.msra.mxu1 %v3078_v23  ;;  %p2659_p1 = scmp.ne.s32.totalorder %s4291_s22, 1 }
  0xcb   : > { %2753 = vmatprep.subr.bf16.mxu1 %v3510_v8 }
  0xcd   : > { %706 = vmatpush1.bf16.msra.mxu0 %v3065_v18 }
  0xce   : > { %707 = vmatprep.subr.bf16.mxu0 %v3066_v19  ;;  %2754 = vmatpush3.bf16.msra.mxu1 %v3079_v26 }
  0xcf   : > { %2755 = vmatprep.subr.bf16.mxu1 %v3510_v8 }
  0xd1   : > { %708 = vmatpush1.bf16.msra.mxu0 %v3068_v20 }
  0xd2   : > { %709 = vmatprep.subr.bf16.mxu0 %v3069_v21  ;;  %2756 = vmatpush3.bf16.msra.mxu1 %v3080_v30 }
  0xd3   : > { %2757 = vmatprep.subr.bf16.mxu1 %v3510_v8 }
  0xd5   : > { %710 = vmatpush1.bf16.msra.mxu0 %v3071_v24 }
  0xd6   : > { %711 = vmatprep.subr.bf16.mxu0 %v3072_v25  ;;  %2758 = vmatpush3.bf16.msra.mxu1 %v3081_v32 }
  0xd7   : > { %2759 = vmatprep.subr.bf16.mxu1 %v3510_v8 }
  0xd9   : > { %712 = vmatpush1.bf16.msra.mxu0 %v3074_v27 }
  0xda   : > { %2765 = vmatprep.subr.bf16.mxu0 %v3510_v8  ;;  %2760 = vmatpush3.bf16.msra.mxu1 %v3082_v33 }
  0xdb   : > { %2771 = vmatprep.subr.bf16.mxu1 %v3510_v8 }
  0xdc   : > { %730 = vmatmul.mubr.bf16.vlgmr.msra.gmra.mxu0 %v524_v31 }
  0xdd   : > { %2767 = vmatprep.mubr.msk.bf16.mxu0 %vm3511_vm0, %v3510_v8  ;;  %2762 = vmatmul.mubr.bf16.vlgmr.msra.gmra.mxu1 %v524_v31 }
  0xde   : > { %2773 = vmatprep.mubr.msk.bf16.mxu1 %vm3511_vm0, %v3510_v8 }
 0x19c   : > { %v731_v39 = vpop.f32.mrf.mxu0 }
 0x19d   : > { %v732_v49 = vadd.f32 %v731_v39, %v560_v44  ;;  %v774_v57 = vpop.f32.mrf.mxu1 }
 0x19e   : > { %v733_v41 = vpop.f32.mrf.mxu0  ;;  %v775_v59 = vadd.f32 %v774_v57, %v568_v56 }
 0x19f   : > { %v734_v42 = vadd.f32 %v733_v41, %v564_v38  ;;  %v3917_v52 = vpack.c.bf16 %v732_v49, %v732_v49  ;;  %v2763_v58 = vpop.f32.mrf.mxu1 }
 0x1a0   : > { %v735_v43 = vpop.f32.mrf.mxu0  ;;  %v3931_v63 = vpack.c.bf16 %v775_v59, %v775_v59 }
 0x1a1   : > { %v3906_v45 = vpack.c.bf16 %v734_v42, %v734_v42  ;;  %v736_v53 = vadd.f32 %v735_v43, %v560_v44  ;;  %v777_v60 = vpop.f32.mrf.mxu1 }
 0x1a2   : > { %v737_v46 = vpop.f32.mrf.mxu0  ;;  %v778_v61 = vadd.f32 %v777_v60, %v568_v56  ;;  %v928_v1 = vsel %vm926_vm2, %v3931_v63, 0 }
 0x1a3   : > { %v738_v47 = vadd.f32 %v737_v46, %v564_v38  ;;  %v808_v48 = vsel %vm803_vm1, %v3906_v45, 0  ;;  %v3924_v54 = vpack.c.bf16 %v736_v53, %v736_v53  ;;  %v2764_v62 = vpop.f32.mrf.mxu1 }
 0x1a4   : > { %2766 = vmatpush3.bf16.xpose.msra.mxu0 %v808_v48  ;;  %v3933_v0 = vpack.c.bf16 %v778_v61, %v778_v61 }
 0x1a5   : > { %v3910_v50 = vpack.c.bf16 %v738_v47, %v738_v47  ;;  %2777 = vmatprep.subr.bf16.mxu0 %v3510_v8 }
 0x1a6   : > { %v974_v2 = vsel %vm926_vm2, %v3933_v0, 0 }
 0x1a7   : > { %1073 = vrot.lane.b32.xlu1 %v3910_v50, %s3512_s2  ;;  %v854_v51 = vsel %vm803_vm1, %v3910_v50, 0 }
 0x1a8   : > { %2772 = vmatpush3.bf16.xpose.msra.mxu1 %v854_v51 }
 0x1a9   : > { %2783 = vmatprep.subr.bf16.mxu1 %v3510_v8 }
 0x1ab   : > { %2768 = vmatmul.mubr.msk.bf16.vlgmr.msra.gmra.mxu0 %vm803_vm1, %v3917_v52 }
 0x1ac   : > { %2779 = vmatprep.mubr.msk.bf16.mxu0 %vm3511_vm0, %v3510_v8  ;;  %2778 = vmatpush3.bf16.msra.mxu0 %v928_v1 }
 0x1ad   : > { %2789 = vmatprep.subr.bf16.mxu0 %v3510_v8 }
 0x1af   : > { %2774 = vmatmul.mubr.msk.bf16.vlgmr.msra.gmra.mxu1 %vm803_vm1, %v3924_v54 }
 0x1b0   : > { %2785 = vmatprep.mubr.msk.bf16.mxu1 %vm3511_vm0, %v3510_v8  ;;  %2784 = vmatpush3.bf16.msra.mxu1 %v974_v2 }
 0x1b1   : > { %2795 = vmatprep.subr.bf16.mxu1 %v3510_v8 }
 0x219   : > { %v1074_v27 = vpop.permute.xlu1 %1073 }
 0x21a   : > { %v1079_v43 = vsel %vm803_vm1, %v1074_v27, 0 }
 0x26b   : > { %v844_v3 = vpop.f32.mrf.mxu0 }
 0x26c   : > { %v896_v4 = vmul.f32 0.17677669, %v844_v3 }
 0x26d   : > { %v2769_v5 = vpop.f32.mrf.mxu0 }
 0x26e   : > { %v899_v6 = vsel %vm898_vm3, %v896_v4, -inf }
 0x26f   : > { %v890_v9 = vpop.f32.mrf.mxu1  ;;  %900 = vmax.xlane.f32.xlu0 %v899_v6  ;;  %v847_v10 = vpop.f32.mrf.mxu0 }
 0x270   : > { %v897_v11 = vmul.f32 0.17677669, %v890_v9 }
 0x271   : > { %v2770_v12 = vpop.f32.mrf.mxu0  ;;  %v2775_v13 = vpop.f32.mrf.mxu1 }
 0x272   : > { %v902_v14 = vsel %vm898_vm3, %v897_v11, -inf }
 0x273   : > { %v893_v15 = vpop.f32.mrf.mxu1  ;;  %903 = vmax.xlane.f32.xlu0 %v902_v14 }
 0x275   : > { %v2776_v16 = vpop.f32.mrf.mxu1 }
 0x289   : > { %1021 = vrot.lane.b32.xlu0 %v3906_v45, %s3512_s2 }
 0x2f8   : > { %v901_v17 = vpop.xlane.xlu0 %900 }
 0x2f9   : > { %v905_v18 = vsub.f32 %v896_v4, %v901_v17 }
 0x2fb   : > { %v907_v19 = vmul.f32 1.442695, %v905_v18 }
 0x2fc   : > { %v904_v20 = vpop.xlane.xlu0 %903 }
 0x2fd   : > { %3131 = vpow2.f32 %v907_v19  ;;  %v906_v21 = vsub.f32 %v897_v11, %v904_v20 }
 0x2ff   : > { %v909_v22 = vmul.f32 1.442695, %v906_v21 }
 0x300   : > { %v1022_v34 = vpop.permute.xlu0 %1021 }
 0x301   : > { %3133 = vpow2.f32 %v909_v22  ;;  %v1027_v39 = vsel %vm803_vm1, %v1022_v34, 0 }
 0x30a   : > { %v3132_v23 = vpop.eup %3131 }
 0x30b   : > { %v911_v24 = vsel %vm898_vm3, %v3132_v23, 0.0 }
 0x30c   : > { %912 = vadd.xlane.f32.xlu1 %v911_v24 }
 0x30e   : > { %v3134_v25 = vpop.eup %3133 }
 0x30f   : > { %v914_v26 = vsel %vm898_vm3, %v3134_v25, 0.0 }
 0x310   : > { %915 = vadd.xlane.f32.xlu1 %v914_v26 }
 0x321   : > { %1018 = vrot.lane.b32.xlu1 %v3917_v52, %s3512_s2 }
 0x325   : > { %1070 = vrot.lane.b32.xlu1 %v3924_v54, %s3512_s2 }
 0x395   : > { %v913_v30 = vpop.xlane.xlu1 %912 }
 0x396   : > { %3135 = vrcp.f32 %v913_v30 }
 0x399   : > { %v916_v31 = vpop.xlane.xlu1 %915 }
 0x39a   : > { %3137 = vrcp.f32 %v916_v31  ;;  %v3085_v31 = vld [vmem:[%s3835_s7 + $0x18] sm:$0xff]  }
 0x39d   : > { %v1019_v44 = vpop.permute.xlu1 %1018 }
 0x3a1   : > { %v1071_v46 = vpop.permute.xlu1 %1070 }
 0x3a3   : > { %v3136_v32 = vpop.eup %3135 }
 0x3a4   : > { %v918_v33 = vmul.f32 %v3136_v32, %v3132_v23 }
 0x3a6   : > { %v921_v37 = vpack.c.bf16 %v918_v33, %v918_v33 }
 0x3a7   : > { %v3138_v38 = vpop.eup %3137 }
 0x3a8   : > { %2780 = vmatmul.mubr.msk.bf16.vlgmr.msra.gmra.mxu0 %vm898_vm3, %v921_v37  ;;  %v920_v41 = vmul.f32 %v3138_v38, %v3134_v25  ;;  %v3083_v37 = vld [vmem:[%s3835_s7 + $0x8] sm:$0xff]  }
 0x3a9   : > { %2790 = vmatpush3.bf16.xpose.msra.mxu0 %v1027_v39  ;;  %2791 = vmatprep.mubr.msk.bf16.mxu0 %vm3511_vm0, %v3510_v8 }
 0x3aa   : > { %v922_v42 = vpack.c.bf16 %v920_v41, %v920_v41  ;;  %2801 = vmatprep.subr.bf16.mxu0 %v3510_v8  ;;  %v3084_v41 = vld [vmem:[%s3835_s7] sm:$0xff]  }
 0x3ac   : > { %2786 = vmatmul.mubr.msk.bf16.vlgmr.msra.gmra.mxu1 %vm898_vm3, %v922_v42 }
 0x3ad   : > { %2796 = vmatpush3.bf16.xpose.msra.mxu1 %v1079_v43  ;;  %2797 = vmatprep.mubr.msk.bf16.mxu1 %vm3511_vm0, %v3510_v8 }
 0x3ae   : > { %2807 = vmatprep.subr.bf16.mxu1 %v3510_v8 }
 0x3b0   : > { %2792 = vmatmul.mubr.msk.bf16.vlgmr.msra.gmra.mxu0 %vm803_vm1, %v1019_v44 }
 0x3b1   : > { %2803 = vmatprep.mubr.msk.bf16.mxu0 %vm3511_vm0, %v3510_v8 }
 0x3b4   : > { %2798 = vmatmul.mubr.msk.bf16.vlgmr.msra.gmra.mxu1 %vm803_vm1, %v1071_v46  ;;  %v3086_v46 = vld [vmem:[%s3835_s7 + $0x10] sm:$0xff]  }
 0x3b5   : > { %2809 = vmatprep.mubr.msk.bf16.mxu1 %vm3511_vm0, %v3510_v8 }
 0x468   : > { %v3967_v47 = vpop.f32.mrf.mxu0 }
 0x46a   : > { %v2781_v48 = vpop.f32.mrf.mxu0 }
 0x46c   : > { %v967_v49 = vpop.f32.mrf.mxu0  ;;  %v3969_v51 = vpop.f32.mrf.mxu1 }
 0x46d   : > { %v1016_v53 = vpack.c.bf16 %v3969_v51, %v3967_v47 }
 0x46e   : > { %v2782_v55 = vpop.f32.mrf.mxu0  ;;  %v2787_v56 = vpop.f32.mrf.mxu1 }
 0x470   : > { %v1013_v57 = vpop.f32.mrf.mxu1  ;;  %v1063_v58 = vpop.f32.mrf.mxu0 }
 0x471   : > { %v1121_v59 = vmul.f32 0.17677669, %v1063_v58 }
 0x472   : > { %v2788_v60 = vpop.f32.mrf.mxu1  ;;  %v2793_v61 = vpop.f32.mrf.mxu0 }
 0x473   : > { %v1123_v62 = vsel %vm898_vm3, %v1121_v59, -inf }
 0x474   : > { %v1115_v1 = vpop.f32.mrf.mxu1  ;;  %1124 = vmax.xlane.f32.xlu0 %v1123_v62  ;;  %v1066_v2 = vpop.f32.mrf.mxu0 }
 0x475   : > { %v1122_v3 = vmul.f32 0.17677669, %v1115_v1 }
 0x476   : > { %v2794_v4 = vpop.f32.mrf.mxu0  ;;  %v2799_v5 = vpop.f32.mrf.mxu1 }
 0x477   : > { %v1126_v6 = vsel %vm898_vm3, %v1122_v3, -inf }
 0x478   : > { %1127 = vmax.xlane.f32.xlu1 %v1126_v6  ;;  %v1118_v9 = vpop.f32.mrf.mxu1 }
 0x47a   : > { %v2800_v10 = vpop.f32.mrf.mxu1 }
 0x489   : > { %1197 = vrot.lane.b32.xlu1 %v3933_v0, %s3512_s2 }
 0x48d   : > { %1360 = vrot.lane.b32.xlu1 %v3906_v45, %s3513_s8 }
 0x491   : > { %1410 = vrot.lane.b32.xlu1 %v3910_v50, %s3513_s8 }
 0x495   : > { %1408 = vrot.lane.b32.xlu1 %v3924_v54, %s3513_s8 }
 0x4fd   : > { %v1125_v11 = vpop.xlane.xlu0 %1124 }
 0x4fe   : > { %v1129_v12 = vsub.f32 %v1121_v59, %v1125_v11 }
 0x500   : > { %v1131_v13 = vmul.f32 1.442695, %v1129_v12 }
 0x501   : > { %v1128_v14 = vpop.xlane.xlu1 %1127 }
 0x502   : > { %3139 = vpow2.f32 %v1131_v13  ;;  %v1130_v15 = vsub.f32 %v1122_v3, %v1128_v14 }
 0x504   : > { %v1133_v16 = vmul.f32 1.442695, %v1130_v15 }
 0x505   : > { %v1198_v17 = vpop.permute.xlu1 %1197 }
 0x506   : > { %3141 = vpow2.f32 %v1133_v16  ;;  %v1203_v18 = vsel %vm926_vm2, %v1198_v17, 0 }
 0x507   : > { %2808 = vmatpush3.bf16.msra.mxu1 %v1203_v18 }
 0x508   : > { %2821 = vmatprep.subr.bf16.mxu1 %v3510_v8 }
 0x509   : > { %v1361_v39 = vpop.permute.xlu1 %1360 }
 0x50a   : > { %v1366_v57 = vsel %vm803_vm1, %v1361_v39, 0 }
 0x50d   : > { %v1411_v42 = vpop.permute.xlu1 %1410 }
 0x50e   : > { %v1416_v43 = vsel %vm803_vm1, %v1411_v42, 0 }
 0x50f   : > { %v3140_v19 = vpop.eup %3139 }
 0x510   : > { %v1135_v20 = vsel %vm898_vm3, %v3140_v19, 0.0 }
 0x511   : > { %1136 = vadd.xlane.f32.xlu0 %v1135_v20  ;;  %v1409_v44 = vpop.permute.xlu1 %1408 }
 0x513   : > { %v3142_v21 = vpop.eup %3141 }
 0x514   : > { %v1138_v22 = vsel %vm898_vm3, %v3142_v21, 0.0 }
 0x515   : > { %1139 = vadd.xlane.f32.xlu0 %v1138_v22 }
 0x52b   : > { %1148 = vrot.lane.b32.xlu0 %v3931_v63, %s3512_s2 }
 0x52f   : > { %1358 = vrot.lane.b32.xlu0 %v3917_v52, %s3513_s8 }
 0x59a   : > { %v1137_v23 = vpop.xlane.xlu0 %1136 }
 0x59b   : > { %3143 = vrcp.f32 %v1137_v23 }
 0x59e   : > { %v1140_v24 = vpop.xlane.xlu0 %1139 }
 0x59f   : > { %3145 = vrcp.f32 %v1140_v24 }
 0x5a2   : > { %v1149_v25 = vpop.permute.xlu0 %1148 }
 0x5a3   : > { %v1154_v26 = vsel %vm926_vm2, %v1149_v25, 0 }
 0x5a4   : > { %2802 = vmatpush3.bf16.msra.mxu0 %v1154_v26 }
 0x5a5   : > { %2813 = vmatprep.subr.bf16.mxu0 %v3510_v8 }
 0x5a6   : > { %v1359_v61 = vpop.permute.xlu0 %1358 }
 0x5a8   : > { %v3144_v27 = vpop.eup %3143 }
 0x5a9   : > { %v1142_v30 = vmul.f32 %v3144_v27, %v3140_v19 }
 0x5ab   : > { %v1145_v32 = vpack.c.bf16 %v1142_v30, %v1142_v30 }
 0x5ac   : > { %v3146_v33 = vpop.eup %3145 }
 0x5ad   : > { %2804 = vmatmul.mubr.msk.bf16.vlgmr.msra.gmra.mxu0 %vm898_vm3, %v1145_v32  ;;  %v1144_v34 = vmul.f32 %v3146_v33, %v3142_v21 }
 0x5ae   : > { %2814 = vmatpush3.bf16.msra.mxu0 %v3085_v31  ;;  %2817 = vmatprep.mubr.msk.bf16.mxu0 %vm3511_vm0, %v3510_v8 }
 0x5af   : > { %v1146_v38 = vpack.c.bf16 %v1144_v34, %v1144_v34  ;;  %2815 = vmatprep.subr.bf16.mxu0 %v3510_v8 }
 0x5b1   : > { %2810 = vmatmul.mubr.msk.bf16.vlgmr.msra.gmra.mxu1 %vm898_vm3, %v1146_v38 }
 0x5b2   : > { %2822 = vmatpush3.bf16.msra.mxu1 %v3083_v37  ;;  %2825 = vmatprep.mubr.msk.bf16.mxu1 %vm3511_vm0, %v3510_v8 }
 0x5b3   : > { %2823 = vmatprep.subr.bf16.mxu1 %v3510_v8  ;;  %2816 = vmatpush3.bf16.msra.mxu0 %v3086_v46 }
 0x5b4   : > { %2829 = vmatprep.subr.bf16.mxu0 %v3510_v8 }
 0x5b6   : > { %2824 = vmatpush3.bf16.msra.mxu1 %v3084_v41 }
 0x5b7   : > { %2835 = vmatprep.subr.bf16.mxu1 %v3510_v8 }
 0x5b9   : > { %2826 = vmatmul.mubr.msk.bf16.vlgmr.msra.gmra.mxu1 %vm803_vm1, %v1016_v53 }
 0x5ba   : > { %2836 = vmatpush3.bf16.xpose.msra.mxu1 %v1416_v43  ;;  %2837 = vmatprep.mubr.msk.bf16.mxu1 %vm3511_vm0, %v3510_v8 }
 0x5bb   : > { %2847 = vmatprep.subr.bf16.mxu1 %v3510_v8 }
 0x5c1   : > { %2838 = vmatmul.mubr.msk.bf16.vlgmr.msra.gmra.mxu1 %vm803_vm1, %v1409_v44 }
 0x5c2   : > { %2849 = vmatprep.mubr.msk.bf16.mxu1 %vm3511_vm0, %v3510_v8 }
 0x66d   : > { %v1190_v48 = vpop.f32.mrf.mxu0 }
 0x66f   : > { %v2805_v47 = vpop.f32.mrf.mxu0 }
 0x671   : > { %v1193_v49 = vpop.f32.mrf.mxu0  ;;  %v1239_v51 = vpop.f32.mrf.mxu1 }
 0x672   : > { %v1245_v53 = vpack.c.bf16 %v1239_v51, %v1190_v48 }
 0x673   : > { %v2806_v55 = vpop.f32.mrf.mxu0  ;;  %v2811_v56 = vpop.f32.mrf.mxu1 }
 0x674   : > { %2818 = vmatmul.mubr.msk.bf16.vlgmr.msra.gmra.mxu0 %vm803_vm1, %v1245_v53  ;;  %v3087_v55 = vld [vmem:[%s3835_s7 + $0x28] sm:$0xff]   ;;  %v3088_v56 = vld [vmem:[%s3835_s7 + $0x20] sm:$0xff]  }
 0x675   : > { %2830 = vmatpush3.bf16.xpose.msra.mxu0 %v1366_v57  ;;  %v1242_v58 = vpop.f32.mrf.mxu1  ;;  %2831 = vmatprep.mubr.msk.bf16.mxu0 %vm3511_vm0, %v3510_v8 }
 0x676   : > { %2841 = vmatprep.subr.bf16.mxu0 %v3510_v8 }
 0x677   : > { %v2812_v59 = vpop.f32.mrf.mxu1 }
 0x679   : > { %v4023_v60 = vpop.f32.mrf.mxu1 }
 0x67b   : > { %v2827_v62 = vpop.f32.mrf.mxu1 }
 0x67c   : > { %2832 = vmatmul.mubr.msk.bf16.vlgmr.msra.gmra.mxu0 %vm803_vm1, %v1359_v61 }
 0x67d   : > { %v4026_v1 = vpop.f32.mrf.mxu1  ;;  %2843 = vmatprep.mubr.msk.bf16.mxu0 %vm3511_vm0, %v3510_v8 }
 0x67f   : > { %v2828_v2 = vpop.f32.mrf.mxu1 }
 0x681   : > { %v1452_v3 = vpop.f32.mrf.mxu1 }
 0x682   : > { %v1459_v4 = vmul.f32 0.17677669, %v1452_v3 }
 0x683   : > { %v2839_v5 = vpop.f32.mrf.mxu1 }
 0x684   : > { %v1463_v6 = vsel %vm898_vm3, %v1459_v4, -inf }
 0x685   : > { %1464 = vmax.xlane.f32.xlu1 %v1463_v6  ;;  %v1455_v9 = vpop.f32.mrf.mxu1 }
 0x687   : > { %v2840_v10 = vpop.f32.mrf.mxu1 }
 0x696   : > { %1532 = vrot.lane.b32.xlu1 %v3933_v0, %s3513_s8 }
 0x69a   : > { %1641 = vrot.lane.b32.xlu1 %v3906_v45, %s3514_s21 }
 0x69e   : > { %1691 = vrot.lane.b32.xlu1 %v3910_v50, %s3514_s21 }
 0x6a2   : > { %1689 = vrot.lane.b32.xlu1 %v3924_v54, %s3514_s21 }
 0x70e   : > { %v1465_v11 = vpop.xlane.xlu1 %1464 }
 0x70f   : > { %v1467_v14 = vsub.f32 %v1459_v4, %v1465_v11 }
 0x711   : > { %v1470_v15 = vmul.f32 1.442695, %v1467_v14 }
 0x712   : > { %v1533_v12 = vpop.permute.xlu1 %1532 }
 0x713   : > { %v1538_v13 = vsel %vm926_vm2, %v1533_v12, 0  ;;  %3147 = vpow2.f32 %v1470_v15 }
 0x714   : > { %2848 = vmatpush3.bf16.msra.mxu1 %v1538_v13 }
 0x715   : > { %2861 = vmatprep.subr.bf16.mxu1 %v3510_v8 }
 0x716   : > { %v1642_v37 = vpop.permute.xlu1 %1641 }
 0x717   : > { %v1647_v39 = vsel %vm803_vm1, %v1642_v37, 0 }
 0x71a   : > { %v1692_v3 = vpop.permute.xlu1 %1691 }
 0x71b   : > { %v1697_v9 = vsel %vm803_vm1, %v1692_v3, 0 }
 0x71e   : > { %v1690_v12 = vpop.permute.xlu1 %1689 }
 0x720   : > { %v3148_v21 = vpop.eup %3147 }
 0x721   : > { %v1475_v24 = vsel %vm898_vm3, %v3148_v21, 0.0 }
 0x734   : > { %v4041_v16 = vpop.f32.mrf.mxu0 }
 0x736   : > { %v2819_v17 = vpop.f32.mrf.mxu0 }
 0x738   : > { %v4043_v45 = vpop.f32.mrf.mxu0 }
 0x73a   : > { %v2820_v18 = vpop.f32.mrf.mxu0 }
 0x73c   : > { %v1402_v50 = vpop.f32.mrf.mxu0 }
 0x73d   : > { %v1458_v19 = vmul.f32 0.17677669, %v1402_v50  ;;  %v1352_v50 = vadd.f32 %v4023_v60, %v4041_v16 }
 0x73e   : > { %v2833_v20 = vpop.f32.mrf.mxu0 }
 0x73f   : > { %v1460_v54 = vsel %vm898_vm3, %v1458_v19, -inf }
 0x740   : > { %1461 = vmax.xlane.f32.xlu0 %v1460_v54  ;;  %v1405_v22 = vpop.f32.mrf.mxu0 }
 0x742   : > { %v2834_v23 = vpop.f32.mrf.mxu0 }
 0x744   : > { %1476 = vadd.xlane.f32.xlu0 %v1475_v24 }
 0x7c9   : > { %v1462_v25 = vpop.xlane.xlu0 %1461 }
 0x7ca   : > { %v1466_v26 = vsub.f32 %v1458_v19, %v1462_v25 }
 0x7cc   : > { %v1468_v27 = vmul.f32 1.442695, %v1466_v26 }
 0x7cd   : > { %v1477_v30 = vpop.xlane.xlu0 %1476 }
 0x7ce   : > { %3149 = vpow2.f32 %v1468_v27 }
 0x7cf   : > { %3151 = vrcp.f32 %v1477_v30 }
 0x7db   : > { %v3150_v31 = vpop.eup %3149 }
 0x7dc   : > { %v3152_v32 = vpop.eup %3151  ;;  %v1472_v33 = vsel %vm898_vm3, %v3150_v31, 0.0 }
 0x7dd   : > { %1473 = vadd.xlane.f32.xlu0 %v1472_v33  ;;  %v1481_v34 = vmul.f32 %v3152_v32, %v3148_v21  ;;  %v1355_v21 = vadd.f32 %v4026_v1, %v4043_v45 }
 0x7df   : > { %v1483_v38 = vpack.c.bf16 %v1481_v34, %v1481_v34 }
 0x7e1   : > { %2850 = vmatmul.mubr.msk.bf16.vlgmr.msra.gmra.mxu1 %vm898_vm3, %v1483_v38 }
 0x7e2   : > { %2862 = vmatpush3.bf16.xpose.msra.mxu1 %v1647_v39  ;;  %2863 = vmatprep.mubr.msk.bf16.mxu1 %vm3511_vm0, %v3510_v8 }
 0x7e3   : > { %2873 = vmatprep.subr.bf16.mxu1 %v3510_v8 }
 0x7f3   : > { %1484 = vrot.lane.b32.xlu0 %v3931_v63, %s3513_s8 }
 0x7f7   : > { %1639 = vrot.lane.b32.xlu0 %v3917_v52, %s3514_s21 }
 0x866   : > { %v1474_v41 = vpop.xlane.xlu0 %1473 }
 0x867   : > { %3153 = vrcp.f32 %v1474_v41 }
 0x86a   : > { %v1485_v42 = vpop.permute.xlu0 %1484 }
 0x86b   : > { %v1490_v43 = vsel %vm926_vm2, %v1485_v42, 0 }
 0x86c   : > { %2842 = vmatpush3.bf16.msra.mxu0 %v1490_v43 }
 0x86d   : > { %2853 = vmatprep.subr.bf16.mxu0 %v3510_v8 }
 0x86e   : > { %v1640_v44 = vpop.permute.xlu0 %1639 }
 0x86f   : > { %2864 = vmatmul.mubr.msk.bf16.vlgmr.msra.gmra.mxu1 %vm803_vm1, %v1640_v44 }
 0x870   : > { %2875 = vmatprep.mubr.msk.bf16.mxu1 %vm3511_vm0, %v3510_v8 }
 0x874   : > { %v3154_v46 = vpop.eup %3153 }
 0x875   : > { %v1479_v48 = vmul.f32 %v3154_v46, %v3150_v31 }
 0x877   : > { %v1482_v47 = vpack.c.bf16 %v1479_v48, %v1479_v48 }
 0x879   : > { %2844 = vmatmul.mubr.msk.bf16.vlgmr.msra.gmra.mxu0 %vm898_vm3, %v1482_v47  ;;  %v3089_v47 = vld [vmem:[%s3835_s7 + $0x38] sm:$0xff]  }
 0x87a   : > { %2857 = vmatprep.mubr.msk.bf16.mxu0 %vm3511_vm0, %v3510_v8  ;;  %2854 = vmatpush3.bf16.msra.mxu0 %v3087_v55 }
 0x87b   : > { %2855 = vmatprep.subr.bf16.mxu0 %v3510_v8 }
 0x87e   : > { %2856 = vmatpush3.bf16.msra.mxu0 %v3088_v56 }
 0x87f   : > { %2867 = vmatprep.subr.bf16.mxu0 %v3510_v8 }
 0x8a1   : > { %v1574_v52 = vpop.f32.mrf.mxu1 }
 0x8a3   : > { %v2851_v49 = vpop.f32.mrf.mxu1 }
 0x8a5   : > { %v1577_v51 = vpop.f32.mrf.mxu1 }
 0x8a7   : > { %v2852_v53 = vpop.f32.mrf.mxu1 }
 0x92f   : > { %v1683_v57 = vpop.f32.mrf.mxu1 }
 0x930   : > { %v1739_v58 = vmul.f32 0.17677669, %v1683_v57 }
 0x931   : > { %v2865_v59 = vpop.f32.mrf.mxu1 }
 0x932   : > { %v1741_v61 = vsel %vm898_vm3, %v1739_v58, -inf }
 0x933   : > { %1742 = vmax.xlane.f32.xlu0 %v1741_v61  ;;  %v1686_v62 = vpop.f32.mrf.mxu1 }
 0x935   : > { %v2866_v2 = vpop.f32.mrf.mxu1 }
 0x939   : > { %v1526_v4 = vpop.f32.mrf.mxu0 }
 0x93a   : > { %v1580_v5 = vpack.c.bf16 %v1574_v52, %v1526_v4  ;;  %v3090_v52 = vld [vmem:[%s3835_s7 + $0x30] sm:$0xff]  }
 0x93b   : > { %v2845_v6 = vpop.f32.mrf.mxu0 }
 0x93c   : > { %2858 = vmatmul.mubr.msk.bf16.vlgmr.msra.gmra.mxu0 %vm803_vm1, %v1580_v5 }
 0x93d   : > { %2868 = vmatpush3.bf16.xpose.msra.mxu0 %v1697_v9  ;;  %v1529_v10 = vpop.f32.mrf.mxu0  ;;  %2869 = vmatprep.mubr.msk.bf16.mxu0 %vm3511_vm0, %v3510_v8 }
 0x93e   : > { %2879 = vmatprep.subr.bf16.mxu0 %v3510_v8 }
 0x93f   : > { %v2846_v11 = vpop.f32.mrf.mxu0 }
 0x944   : > { %2870 = vmatmul.mubr.msk.bf16.vlgmr.msra.gmra.mxu0 %vm803_vm1, %v1690_v12 }
 0x945   : > { %2881 = vmatprep.mubr.msk.bf16.mxu0 %vm3511_vm0, %v3510_v8 }
 0x9bc   : > { %v1743_v13 = vpop.xlane.xlu0 %1742 }
 0x9bd   : > { %v1747_v14 = vsub.f32 %v1739_v58, %v1743_v13  ;;  %v3091_v13 = vld [vmem:[%s3837_s18 + $0x70] ss:$8 sps:$4 sm:$0xff]  }
 0x9bf   : > { %v1749_v15 = vmul.f32 1.442695, %v1747_v14  ;;  %v3093_v14 = vld [vmem:[%s3837_s18 + $0x74] ss:$8 sps:$4 sm:$0xff]  }
 0x9c1   : > { %3155 = vpow2.f32 %v1749_v15 }
 0x9ce   : > { %v3156_v17 = vpop.eup %3155 }
 0x9cf   : > { %v1753_v18 = vsel %vm898_vm3, %v3156_v17, 0.0 }
 0x9d0   : > { %1754 = vadd.xlane.f32.xlu0 %v1753_v18 }
 0x9fc   : > { %v1630_v19 = vpop.f32.mrf.mxu0 }
 0x9fd   : > { %v1637_v20 = vadd.f32 %v1630_v19, %v1352_v50 }
 0x9fe   : > { %v2859_v54 = vpop.f32.mrf.mxu0 }
 0x9ff   : > { %v3096_v54 = vld [vmem:[%s3837_s18 + $0x64] ss:$8 sps:$4 sm:$0xff]  }
 0xa00   : > { %v1633_v22 = vpop.f32.mrf.mxu0 }
 0xa01   : > { %v1638_v23 = vadd.f32 %v1633_v22, %v1355_v21  ;;  %v3094_v21 = vld [vmem:[%s3837_s18 + $0x60] ss:$8 sps:$4 sm:$0xff]   ;;  %v3099_v22 = vld [vmem:[%s3837_s18 + $0x54] ss:$8 sps:$4 sm:$0xff]  }
 0xa02   : > { %v2860_v24 = vpop.f32.mrf.mxu0 }
 0xa03   : > { %v3102_v24 = vld [vmem:[%s3837_s18 + $0x44] ss:$8 sps:$4 sm:$0xff]  }
 0xa04   : > { %v1733_v25 = vpop.f32.mrf.mxu0 }
 0xa05   : > { %v1740_v26 = vmul.f32 0.17677669, %v1733_v25  ;;  %v3100_v25 = vld [vmem:[%s3837_s18 + $0x40] ss:$8 sps:$4 sm:$0xff]  }
 0xa06   : > { %v2871_v27 = vpop.f32.mrf.mxu0 }
 0xa07   : > { %v1744_v30 = vsel %vm898_vm3, %v1740_v26, -inf  ;;  %v3103_v27 = vld [vmem:[%s3837_s18 + $0x30] ss:$8 sps:$4 sm:$0xff]  }
 0xa08   : > { %1745 = vmax.xlane.f32.xlu1 %v1744_v30  ;;  %v1736_v31 = vpop.f32.mrf.mxu0  ;;  %v3108_v30 = vld [vmem:[%s3837_s18 + $0x24] ss:$8 sps:$4 sm:$0xff]  }
 0xa09   : > { %v3106_v31 = vld [vmem:[%s3837_s18 + $0x20] ss:$8 sps:$4 sm:$0xff]  }
 0xa0a   : > { %v2872_v32 = vpop.f32.mrf.mxu0 }
 0xa0b   : > { %v3111_v32 = vld [vmem:[%s3837_s18 + $0x14] ss:$8 sps:$4 sm:$0xff]  }
 0xa19   : > { %1813 = vrot.lane.b32.xlu1 %v3933_v0, %s3514_s21 }
 0xa59   : > { %v1755_v38 = vpop.xlane.xlu0 %1754 }
 0xa91   : > { %v1746_v60 = vpop.xlane.xlu1 %1745 }
 0xa92   : > { %v1748_v16 = vsub.f32 %v1740_v26, %v1746_v60  ;;  %v3105_v26 = vld [vmem:[%s3837_s18 + $0x34] ss:$8 sps:$4 sm:$0xff]   ;;  %v3109_v60 = vld [vmem:[%s3837_s18 + $0x10] ss:$8 sps:$4 sm:$0xff]  }
 0xa94   : > { %v1751_v33 = vmul.f32 1.442695, %v1748_v16  ;;  %v3114_v16 = vld [vmem:[%s3837_s18 + $0x4] ss:$8 sps:$4 sm:$0xff]  }
 0xa95   : > { %v1814_v34 = vpop.permute.xlu1 %1813 }
 0xa96   : > { %3157 = vpow2.f32 %v1751_v33  ;;  %v1819_v1 = vsel %vm926_vm2, %v1814_v34, 0  ;;  %v3112_v33 = vld [vmem:[%s3837_s18] ss:$8 sps:$4 sm:$0xff]   ;;  %v3115_v34 = vld [vmem:[%s3839_s0 + $0x78] sm:$0xff]  }
 0xa97   : > { %2880 = vmatpush3.bf16.msra.mxu0 %v1819_v1  ;;  %3159 = vrcp.f32 %v1755_v38  ;;  %v3116_v1 = vld [vmem:[%s3839_s0 + $0x38] sm:$0xff]   ;;  %v3119_v38 = vld [vmem:[%s3839_s0 + $0x68] sm:$0xff]  }
 0xa98   : > { %2068 = vmatprep.subr.bf16.mxu0 %v3093_v14 }
 0xaa3   : > { %v3158_v45 = vpop.eup %3157 }
 0xaa4   : > { %v1756_v37 = vsel %vm898_vm3, %v3158_v45, 0.0  ;;  %v3160_v39 = vpop.eup %3159 }
 0xaa5   : > { %1757 = vadd.xlane.f32.xlu0 %v1756_v37  ;;  %v1760_v41 = vmul.f32 %v3160_v39, %v3156_v17  ;;  %v3118_v37 = vld [vmem:[%s3839_s0 + $0x30] sm:$0xff]   ;;  %v3120_v39 = vld [vmem:[%s3839_s0 + $0x28] sm:$0xff]  }
 0xaa7   : > { %v1763_v44 = vpack.c.bf16 %v1760_v41, %v1760_v41  ;;  %v3122_v41 = vld [vmem:[%s3839_s0 + $0x20] sm:$0xff]  }
 0xabb   : > { %1765 = vrot.lane.b32.xlu0 %v3931_v63, %s3514_s21 }
 0xb2e   : > { %v1758_v0 = vpop.xlane.xlu0 %1757 }
 0xb2f   : > { %3161 = vrcp.f32 %v1758_v0  ;;  %v3121_v0 = vld [vmem:[%s3839_s0 + $0x60] sm:$0xff]  }
 0xb32   : > { %v1766_v42 = vpop.permute.xlu0 %1765 }
 0xb33   : > { %v1771_v43 = vsel %vm926_vm2, %v1766_v42, 0  ;;  %v3123_v42 = vld [vmem:[%s3839_s0 + $0x58] sm:$0xff]  }
 0xb34   : > { %2874 = vmatpush3.bf16.msra.mxu1 %v1771_v43  ;;  %v3124_v43 = vld [vmem:[%s3839_s0 + $0x18] sm:$0xff]  }
 0xb35   : > { %2885 = vmatprep.subr.bf16.mxu1 %v3510_v8 }
 0xb37   : > { %2876 = vmatmul.mubr.msk.bf16.vlgmr.msra.gmra.mxu1 %vm898_vm3, %v1763_v44 }
 0xb38   : > { %2889 = vmatprep.mubr.msk.bf16.mxu1 %vm3511_vm0, %v3510_v8  ;;  %2886 = vmatpush3.bf16.msra.mxu1 %v3089_v47 }
 0xb39   : > { %2887 = vmatprep.subr.bf16.mxu1 %v3510_v8 }
 0xb3c   : > { %v3162_v63 = vpop.eup %3161  ;;  %2888 = vmatpush3.bf16.msra.mxu1 %v3090_v52 }
 0xb3d   : > { %v1762_v46 = vmul.f32 %v3162_v63, %v3158_v45  ;;  %v3117_v45 = vld [vmem:[%s3839_s0 + $0x70] sm:$0xff]   ;;  %2723 = vmatprep.subr.bf16.mxu1 %v3115_v34 }
 0xb3f   : > { %v1764_v48 = vpack.c.bf16 %v1762_v46, %v1762_v46 }
 0xb41   : > { %2882 = vmatmul.mubr.msk.bf16.vlgmr.msra.gmra.mxu0 %vm898_vm3, %v1764_v48 }
 0xb42   : > { %2100 = vmatprep.mubr.bf16.mxu0 %v3509_v7  ;;  %v1924_v7 = vsub.s32 1, %v3895_v35  ;;  %2069 = vmatpush1.bf16.msra.mxu0 %v3091_v13 }
 0xb43   : > { %2070 = vmatprep.subr.bf16.mxu0 %v3096_v54 }
 0xb44   : > { %v1925_v8 = vrot.slane %v3903_v40, %v1924_v7 }
 0xb46   : > { %2071 = vmatpush1.bf16.msra.mxu0 %v3094_v21 }
 0xb47   : > { %2072 = vmatprep.subr.bf16.mxu0 %v3099_v22 }
 0xbf7   : > { %v1807_v49 = vpop.f32.mrf.mxu1 }
 0xbf9   : > { %v2877_v51 = vpop.f32.mrf.mxu1 }
 0xbfb   : > { %v1810_v53 = vpop.f32.mrf.mxu1 }
 0xbfd   : > { %v2878_v55 = vpop.f32.mrf.mxu1 }
 0xc01   : > { %v1855_v56 = vpop.f32.mrf.mxu0 }
 0xc02   : > { %v1861_v57 = vpack.c.bf16 %v1855_v56, %v1807_v49  ;;  %v1953_v49 = vsub.s32 2, %v3895_v35  ;;  %v1959_v56 = vsub.s32 3, %v3895_v35 }
 0xc03   : > { %v2883_v58 = vpop.f32.mrf.mxu0 }
 0xc04   : > { %2890 = vmatmul.mubr.msk.bf16.vlgmr.msra.gmra.mxu1 %vm803_vm1, %v1861_v57  ;;  %v1954_v55 = vrot.slane %v3903_v40, %v1953_v49  ;;  %v2322_v49 = vsub.s32 7, %v3895_v35 }
 0xc05   : > { %v1858_v59 = vpop.f32.mrf.mxu0  ;;  %2724 = vmatpush3.bf16.msra.mxu1 %v3116_v1 }
 0xc06   : > { %2725 = vmatprep.subr.bf16.mxu1 %v3117_v45 }
 0xc07   : > { %v2884_v61 = vpop.f32.mrf.mxu0 }
 0xc08   : > { %v1960_v61 = vrot.slane %v3903_v40, %v1959_v56 }
 0xc09   : > { %2726 = vmatpush3.bf16.msra.mxu1 %v3118_v37 }
 0xc0a   : > { %2727 = vmatprep.subr.bf16.mxu1 %v3119_v38 }
 0xc0d   : > { %2728 = vmatpush3.bf16.msra.mxu1 %v3120_v39 }
 0xc0e   : > { %2729 = vmatprep.subr.bf16.mxu1 %v3121_v0 }
 0xc11   : > { %2730 = vmatpush3.bf16.msra.mxu1 %v3122_v41 }
 0xc12   : > { %2731 = vmatprep.subr.bf16.mxu1 %v3123_v42 }
 0xc15   : > { %2732 = vmatpush3.bf16.msra.mxu1 %v3124_v43 }
 0xcc4   : > { %v1911_v62 = vpop.f32.mrf.mxu1 }
 0xcc5   : > { %v1918_v2 = vadd.f32 %v1911_v62, %v1637_v20 }
 0xcc6   : > { %v2891_v3 = vpop.f32.mrf.mxu1 }
 0xcc7   : > { %v1920_v4 = vadd.f32 %v1918_v2, %v3874_v28  ;;  %v3125_v3 = vld [vmem:[%s3839_s0 + $0x50] sm:$0xff]  }
 0xcc8   : > { %v1914_v5 = vpop.f32.mrf.mxu1  ;;  %2733 = vmatprep.subr.bf16.mxu1 %v3125_v3 }
 0xcc9   : > { %v1919_v6 = vadd.f32 %v1914_v5, %v1638_v23  ;;  %v1926_v9 = vadd.f32 %v1925_v8, %v1920_v4  ;;  %v3097_v23 = vld [vmem:[%s3837_s18 + $0x50] ss:$8 sps:$4 sm:$0xff]   ;;  %v3127_v5 = vld [vmem:[%s3839_s0 + $0x48] sm:$0xff]  }
 0xcca   : > { %v2892_v10 = vpop.f32.mrf.mxu1  ;;  %2073 = vmatpush1.bf16.msra.mxu0 %v3097_v23  ;;  %v3126_v4 = vld [vmem:[%s3839_s0 + $0x10] sm:$0xff]  }
 0xccb   : > { %v1921_v11 = vadd.f32 %v1919_v6, %v3876_v29  ;;  %1928 = vadd.xlane.f32.xlu1 %v1926_v9  ;;  %2074 = vmatprep.subr.bf16.mxu0 %v3102_v24  ;;  %v3128_v6 = vld [vmem:[%s3839_s0 + $0x8] sm:$0xff]   ;;  %v3130_v10 = vld [vmem:[%s3839_s0] sm:$0xff]  }
 0xccc   : > { %2734 = vmatpush3.bf16.msra.mxu1 %v3126_v4 }
 0xccd   : > { %v1927_v12 = vadd.f32 %v1925_v8, %v1921_v11  ;;  %2735 = vmatprep.subr.bf16.mxu1 %v3127_v5  ;;  %v1982_v11 = vsub.s32 4, %v3895_v35 }
 0xcce   : > { %2075 = vmatpush1.bf16.msra.mxu0 %v3100_v25  ;;  %v2151_v25 = vsub.s32 5, %v3895_v35 }
 0xccf   : > { %1930 = vadd.xlane.f32.xlu0 %v1927_v12  ;;  %2076 = vmatprep.subr.bf16.mxu0 %v3105_v26  ;;  %v1987_v13 = vrot.slane %v3898_v36, %v1982_v11  ;;  %v1983_v14 = vrot.slane %v3903_v40, %v1982_v11 }
 0xcd0   : > { %2736 = vmatpush3.bf16.msra.mxu1 %v3128_v6  ;;  %v2152_v26 = vrot.slane %v3903_v40, %v2151_v25 }
 0xcd2   : > { %2077 = vmatpush1.bf16.msra.mxu0 %v3103_v27 }
 0xcd3   : > { %2078 = vmatprep.subr.bf16.mxu0 %v3108_v30 }
 0xcd6   : > { %2079 = vmatpush1.bf16.msra.mxu0 %v3106_v31 }
 0xcd7   : > { %2080 = vmatprep.subr.bf16.mxu0 %v3111_v32 }
 0xcda   : > { %2081 = vmatpush1.bf16.msra.mxu0 %v3109_v60 }
 0xcdb   : > { %2082 = vmatprep.subr.bf16.mxu0 %v3114_v16 }
 0xcde   : > { %2083 = vmatpush1.bf16.msra.mxu0 %v3112_v33 }
 0xd54   : > { %v1929_v15 = vpop.xlane.xlu1 %1928 }
 0xd55   : > { %v1933_v17 = vmul.f32 0.0078125, %v1929_v15 }
 0xd57   : > { %v4107_v28 = vsub.f32 %v1926_v9, %v1933_v17  ;;  %v3129_v9 = vld [vmem:[%s3839_s0 + $0x40] sm:$0xff]  }
 0xd58   : > { %v1931_v18 = vpop.xlane.xlu0 %1930  ;;  %2737 = vmatprep.subr.bf16.mxu1 %v3129_v9 }
 0xd59   : > { %v1934_v50 = vmul.f32 0.0078125, %v1931_v18  ;;  %v1937_v29 = vmul.f32 %v4107_v28, %v4107_v28  ;;  %2738 = vmatpush3.bf16.msra.mxu1 %v3130_v10 }
 0xd5b   : > { %v4111_v19 = vsub.f32 %v1927_v12, %v1934_v50  ;;  %1939 = vadd.xlane.f32.xlu0 %v1937_v29 }
 0xd5d   : > { %v1938_v20 = vmul.f32 %v4111_v19, %v4111_v19 }
 0xd5f   : > { %1941 = vadd.xlane.f32.xlu1 %v1938_v20 }
 0xde4   : > { %v1940_v44 = vpop.xlane.xlu0 %1939 }
 0xde5   : > { %v1943_v63 = vmul.f32 0.0078125, %v1940_v44 }
 0xde7   : > { %v1945_v46 = vadd.f32 1e-05, %v1943_v63 }
 0xde8   : > { %v1942_v48 = vpop.xlane.xlu1 %1941 }
 0xde9   : > { %3163 = vrsqrt.f32 %v1945_v46  ;;  %v1944_v47 = vmul.f32 0.0078125, %v1942_v48 }
 0xdeb   : > { %v1946_v52 = vadd.f32 1e-05, %v1944_v47 }
 0xded   : > { %3165 = vrsqrt.f32 %v1946_v52  ;;  %v2316_v52 = vsub.s32 6, %v3895_v35 }
 0xdf6   : > { %v3164_v51 = vpop.eup %3163 }
 0xdf7   : > { %v1949_v53 = vmul.f32 %v3164_v51, %v4107_v28  ;;  %v3171_v51 = vld [vmem:[%s3841_s23] sm:$0xff] }
 0xdf8   : > { %v2323_v56 = vrot.slane %v3171_v51, %v2322_v49 }
 0xdf9   : > { %v1955_v59 = vmul.f32 %v1954_v55, %v1949_v53  ;;  %v2317_v53 = vrot.slane %v3171_v51, %v2316_v52 }
 0xdfa   : > { %v3166_v57 = vpop.eup %3165 }
 0xdfb   : > { %v1950_v58 = vmul.f32 %v3166_v57, %v4111_v19  ;;  %v1961_v62 = vadd.f32 %v1960_v61, %v1955_v59 }
 0xdfd   : > { %v1956_v7 = vmul.f32 %v1954_v55, %v1950_v58 }
 0xdff   : > { %v1962_v2 = vadd.f32 %v1960_v61, %v1956_v7 }
 0xe01   : > { %v1963_v8 = vpack.c.bf16 %v1962_v2, %v1961_v62 }
 0xe03   : > { %2101 = vmatmul.mubr.bf16.vlgmr.msra.gmra.mxu0 %v1963_v8 }
 0xec3   : > { %v2102_v12 = vpop.f32.mrf.mxu0 }
 0xec4   : > { %v2103_v50 = vadd.f32 %v2102_v12, %v1983_v14 }
 0xec5   : > { %v2104_v15 = vpop.f32.mrf.mxu0 }
 0xec6   : > { %v2105_v28 = vadd.f32 %v2104_v15, %v1987_v13  ;;  %v2111_v22 = vmax.f32 %v2103_v50, 0.0 }
 0xec7   : > { %v2106_v17 = vpop.f32.mrf.mxu0 }
 0xec8   : > { %v2107_v18 = vadd.f32 %v2106_v17, %v1983_v14  ;;  %v2112_v54 = vmax.f32 %v2105_v28, 0.0 }
 0xec9   : > { %v2108_v29 = vpop.f32.mrf.mxu0 }
 0xeca   : > { %v2109_v19 = vadd.f32 %v2108_v29, %v1987_v13  ;;  %v2113_v20 = vmax.f32 %v2107_v18, 0.0 }
 0xecc   : > { %v2114_v21 = vmax.f32 %v2109_v19, 0.0  ;;  %v2115_v24 = vpack.c.bf16 %v2113_v20, %v2111_v22 }
 0xece   : > { %v2116_v23 = vpack.c.bf16 %v2114_v21, %v2112_v54 }
 0xed0   : > { %2281 = vmatprep.mubr.bf16.mxu1 %v2116_v23 }
 0xed1   : > { %2282 = vmatmul.mubr.bf16.vlgmr.msra.gmra.mxu1 %v2115_v24 }
 0xf91   : > { %v2739_v36 = vpop.f32.mrf.mxu1 }
 0xf93   : > { %v2740_v27 = vpop.f32.mrf.mxu1 }
 0xf94   : > { %v2741_v30 = vadd.f32 %v2740_v27, %v2739_v36 }
 0xf95   : > { %v2742_v31 = vpop.f32.mrf.mxu1 }
 0xf96   : > { %v2284_v32 = vadd.f32 %v2741_v30, %v2152_v26 }
 0xf97   : > { %v2743_v60 = vpop.f32.mrf.mxu1 }
 0xf98   : > { %v2744_v16 = vadd.f32 %v2743_v60, %v2742_v31  ;;  %v2290_v33 = vadd.f32 %v2284_v32, %v1961_v62 }
 0xf9a   : > { %v2287_v34 = vadd.f32 %v2744_v16, %v2152_v26  ;;  %2292 = vadd.xlane.f32.xlu0 %v2290_v33 }
 0xf9c   : > { %v2291_v1 = vadd.f32 %v2287_v34, %v1962_v2 }
 0xf9e   : > { %2294 = vadd.xlane.f32.xlu1 %v2291_v1 }
0x1023   : > { %v2293_v45 = vpop.xlane.xlu0 %2292 }
0x1024   : > { %v2296_v37 = vmul.f32 0.0078125, %v2293_v45 }
0x1026   : > { %v2298_v38 = vsub.f32 %v2290_v33, %v2296_v37 }
0x1027   : > { %v2295_v39 = vpop.xlane.xlu1 %2294 }
0x1028   : > { %v2297_v0 = vmul.f32 0.0078125, %v2295_v39  ;;  %v2300_v41 = vmul.f32 %v2298_v38, %v2298_v38 }
0x102a   : > { %v2299_v42 = vsub.f32 %v2291_v1, %v2297_v0  ;;  %2302 = vadd.xlane.f32.xlu0 %v2300_v41 }
0x102c   : > { %v2301_v40 = vmul.f32 %v2299_v42, %v2299_v42 }
0x102e   : > { %2304 = vadd.xlane.f32.xlu1 %v2301_v40 }
0x10b3   : > { %v2303_v43 = vpop.xlane.xlu0 %2302 }
0x10b4   : > { %v2306_v44 = vmul.f32 0.0078125, %v2303_v43 }
0x10b6   : > { %v2308_v63 = vadd.f32 1e-05, %v2306_v44 }
0x10b7   : > { %v2305_v46 = vpop.xlane.xlu1 %2304 }
0x10b8   : > { %3167 = vrsqrt.f32 %v2308_v63  ;;  %v2307_v48 = vmul.f32 0.0078125, %v2305_v46 }
0x10ba   : > { %v2309_v47 = vadd.f32 1e-05, %v2307_v48 }
0x10bc   : > { %3169 = vrsqrt.f32 %v2309_v47 }
0x10c5   : > { %v3168_v55 = vpop.eup %3167 }
0x10c6   : > { %v2312_v57 = vmul.f32 %v3168_v55, %v2298_v38 }
0x10c8   : > { %v2318_v58 = vmul.f32 %v2317_v53, %v2312_v57 }
0x10c9   : > { %v3170_v59 = vpop.eup %3169 }
0x10ca   : > { %v2324_v61 = vadd.f32 %v2323_v56, %v2318_v58  ;;  %v2313_v7 = vmul.f32 %v3170_v59, %v2299_v42 }
0x10cc   : > { %2326 = vst [vmem:[#allocation2] sm:$0xff] %v2324_v61  ;;  %v2319_v62 = vmul.f32 %v2317_v53, %v2313_v7  ;;  %2331 = sbr.rel (%p2659_p1) target bundleno = 4315 (0x10db), region = 84 }
0x10ce   : > { %v2325_v2 = vadd.f32 %v2323_v56, %v2319_v62 }
0x10d0   : > { %2327 = vst [vmem:[#allocation2 + $0x8] sm:$0xff] %v2325_v2 }
0x10d1   : > { %v2334_v35 = vld [vmem:[%s3818_s10] sm:$0xff]  ;;  %v2335_v5 = vld [vmem:[%s3818_s10 + $0x8] sm:$0xff] }
0x10d3   : > { %v2332_v8 = vld [vmem:[#allocation2] sm:$0xff] }
0x10d4   : > { %v2336_v4 = vadd.f32 %v2334_v35, %v2332_v8 }
0x10d6   : > { %2338 = vst [vmem:[%s3843_s19] sm:$0xff] %v2336_v4 }
0x10d7   : > { %v2333_v3 = vld [vmem:[#allocation2 + $0x8] sm:$0xff] }
0x10d8   : > { %v2337_v6 = vadd.f32 %v2335_v5, %v2333_v3 }
0x10da   : > { %2339 = vst [vmem:[%s3843_s19 + $0x8] sm:$0xff] %v2337_v6 }
0x10db PF: > { %s4292_s16 = sld [smem:[#allocation20_spill]]  ;;  %s2354_s15 = sshll.u32 %s3843_s19, 4  ;;  %s4171_s15 = int_to_ptr.vmem [resolvable:$true] %s2354_s15 }
0x10dc   : > { %s4293_s14 = sld [smem:[#allocation29_spill]]  ;;  %s4175_s10 = scalar_lea.sflag [#allocation5], %s398_s12 }
0x10dd   : > { %s3366_s7 = scalar_lea.vmem %s4171_s15, 256  ;;  %p4294_p13 = scmp.ne.s32.totalorder %s4280_s1, 0 }
0x10de   : > { %p3367_p12 = scmp.ne.s32.totalorder %s4171_s15, %s3366_s7  ;;  %s3515_s18 = smov [#allocation13]  }
0x10df   : > { %s3370_s0 = sshll.u32 %s3515_s18, 4  ;;  %s3371_s0 = int_to_ptr.vmem [resolvable:$false] %s3370_s0 }
0x10e0   : > { %p3368_p3 = pnand %p3367_p12, %p4294_p13  ;;  %s3372_s23 = scalar_lea.vmem %s3371_s0, 512 }
0x10e1   : > { %s2669_s13 = sshll.u32 %s4292_s16, 8  ;;  %p3373_p7 = scmp.lt.s32.totalorder %s4171_s15, %s3371_s0 }
0x10e2   : > { %s4168_s26 = scalar_lea.hbm %s4293_s14, %s2669_s13  ;;  %p3369_p0 = pneg %p3368_p3 }
0x10e3   : > { %p3374_p4 = scmp.lt.s32.totalorder %s3372_s23, %s3366_s7 }
0x10e5   : > { %p3375_p6 = por %p3374_p4, %p3373_p7 }
0x10e7   : > { %p3376_p9 = pnand %p3375_p6, %p3369_p0 }
0x10e9   : > { %3379 = shalt.err (!%p3376_p9)
}
0x10ea   : > { %s3380_s12 = scalar_lea.hbm %s4168_s26, 256  ;;  %s3384_s2 = scalar_lea.hbm %s4293_s14, 512 }
0x10eb   : > { %p3381_p2 = scmp.ne.s32.totalorder %s4168_s26, %s3380_s12  ;;  %p3385_p8 = scmp.lt.s32.totalorder %s4168_s26, %s4293_s14 }
0x10ec   : > { %p3386_p11 = scmp.lt.s32.totalorder %s3384_s2, %s3380_s12 }
0x10ed   : > { %p3382_p5 = pnand %p3381_p2, %p4294_p13 }
0x10ee   : > { %p3387_p1 = por %p3386_p11, %p3385_p8 }
0x10ef   : > { %p3383_p10 = pneg %p3382_p5 }
0x10f1   : > { %p3388_p12 = pnand %p3387_p1, %p3383_p10 }
0x10f3   : > { %3391 = shalt.err (!%p3388_p12)
}
0x10f4   : > { %s3516_s22 = smov 128   ;;  %s3517_s16 = smov 8  }
0x10f5   : > { %2915 = dma.vmem_to_hbm [thread:$0]  (%p4294_p13), %s4171_s15, 256, %s4168_s26, %s4175_s10, %s3516_s22, %s3516_s22, %s3517_s16  }
0x10f6 PF: > { %p2947_p3 = scmp.ge.s32.totalorder %s3494_s11, 2  ;;  %s2369_s13 = sand.u32 1, %s3466_s27  }
0x10f7   : > { %p4295_p0 = scmp.ne.s32.totalorder %s4281_s24, 0  ;;  %s2370_s30 = scalar_lea.sflag [#allocation5], %s2369_s13 }
0x10f9   : > { %p2941_p7 = pnand %p2947_p3, %p4295_p0 }
0x10fb   : > { %p2942_p4 = pneg %p2941_p7 }
0x10fd   : > { %3449 = dma.done.wait (%p2942_p4), %s2370_s30, 256  }
0x10fe   : > { %3451 = vsyncadd (%p2942_p4), %s2370_s30, 4294967040  ;;  %s24_s11 = sadd.s32 1, %s3494_s11   ;;  %s4296_s20 = sld [smem:[#allocation18_spill]] }
0x10ff   : > { %p21_p6 = scmp.ge.s32.totalorder %s24_s11, 6   ;;  %s4297_s26 = sld [smem:[#allocation25_spill]] }
0x1100   : > { %s4298_s1 = sld [smem:[#allocation24_spill]]  ;;  %s4302_s24 = smov %s3458_s25 }
0x1101   : > { %s4299_s8 = sld [smem:[#allocation21_spill]]  ;;  %s4304_s27 = smov %s3470_s28 }
0x1102   : > { %s4300_s15 = sld [smem:[#allocation22_spill]]  ;;  %s4305_s28 = smov %s3474_s29 }
0x1103   : > { %s4301_s10 = sld [smem:[#allocation23_spill]]  ;;  %s4307_s30 = smov %s3486_s9 }
0x1104   : > { %s4303_s25 = smov %s4296_s20  ;;  %23 = sbr.rel (!%p21_p6) target bundleno = 15 (0xf), region = 160 }
0x1106   : > { %s4306_s29 = smov %s4298_s1 }
0x1108   : > { %s4308_s9 = smov %s4300_s15 }
0x1109   :  { %2375 = vsyncpa [#allocation4], 1 }
0x110a   :  { %2377 = vsyncpa [#allocation4 + $0x1], 1 }
0x110b   :  { %2378 = vsyncpa [#allocation7], 1 }
0x110c   :  { %2379 = vsyncpa [#allocation5], 1 }
0x110d   :  { %2381 = vsyncpa [#allocation5 + $0x1], 1 }

</bundles_post_ra>
